<compile_context>
chip_gen: v7x
topology: tpu7x:2x2x1
jax: 0.10.0
libtpu: 0.0.40
codegen_flags: <defaults>
</compile_context>

<pallas_src>
import jax
import jax.numpy as jnp
from jax.experimental import pallas as pl
from jax.experimental.pallas import tpu as pltpu


def _round_up(x, m):
    return (x + m - 1) // m * m


# ------------------------------ Pallas kernel ------------------------------- #

def _fused_lstm_model_kernel(x_ref, wx_ref, wh_ref, b_ref,
                             fc1w_ref, fc1b_ref, fc2w_ref, fc2b_ref,
                             out_ref, seq_ref):
    """One grid step == one LSTM layer (grid=(L,), serial via `seq_ref` scratch).

    x_ref    : (T*B, HP)  f32   padded, time-major input sequence
    wx_ref   : (1, HP, 4*HP) bf16  this layer's W_ih^T (lane-padded per gate)
    wh_ref   : (1, HP, 4*HP) bf16  this layer's W_hh^T (lane-padded per gate)
    b_ref    : (1, 1, 4*HP)  f32   combined bias (b_ih + b_hh)
    fc1w_ref : (HP, FH)  bf16      fc1 weight^T (rows >= H and cols >= hidden are 0)
    fc1b_ref : (1, FH)   f32
    fc2w_ref : (FH, FH)  bf16      fc2 weight^T in column 0, rest 0
    fc2b_ref : (1, FH)   f32
    out_ref  : (B, FH)   f32       column 0 holds the model output
    seq_ref  : (T*B, HP) f32 VMEM scratch — current layer input / next layer input
    """
    layer = pl.program_id(0)
    n_layers = pl.num_programs(0)
    TB, HP = seq_ref.shape
    B = out_ref.shape[0]
    T = TB // B

    # Layer 0 consumes the raw (padded) sequence; later layers consume the previous
    # layer's hidden states already sitting in the persistent scratch.
    @pl.when(layer == 0)
    def _():
        seq_ref[...] = x_ref[...]

    wx = wx_ref[0]          # (HP, 4*HP) bf16
    wh = wh_ref[0]          # (HP, 4*HP) bf16
    b = b_ref[0]            # (1, 4*HP)  f32

    # Hoisted input->gates projection for ALL timesteps at once (M = T*B rows on the
    # MXU) with the bias broadcast folded in. This is off the recurrent critical path.
    xg = jnp.dot(seq_ref[...].astype(jnp.bfloat16), wx,
                 preferred_element_type=jnp.float32) + b          # (T*B, 4*HP) f32

    h = jnp.zeros((B, HP), jnp.float32)
    c = jnp.zeros((B, HP), jnp.float32)
    for t in range(T):  # T is small & static here; unrolled on purpose.
        # Only the recurrent half stays in the loop: K = HP = 128, bf16 operands.
        gates = xg[t * B:(t + 1) * B, :] + jnp.dot(
            h.astype(jnp.bfloat16), wh, preferred_element_type=jnp.float32)
        # PyTorch gate order: i, f, g, o — each slice is 128-lane aligned.
        i = jax.nn.sigmoid(gates[:, 0 * HP:1 * HP])
        f = jax.nn.sigmoid(gates[:, 1 * HP:2 * HP])
        g = jnp.tanh(gates[:, 2 * HP:3 * HP])
        o = jax.nn.sigmoid(gates[:, 3 * HP:4 * HP])
        c = f * c + i * g
        h = o * jnp.tanh(c)
        seq_ref[t * B:(t + 1) * B, :] = h                          # feeds next layer

    # FC head only after the last LSTM layer; h == out[:, -1, :] (padded cols are 0).
    @pl.when(layer == n_layers - 1)
    def _():
        h16 = h.astype(jnp.bfloat16)
        hdn = jnp.dot(h16, fc1w_ref[...],
                      preferred_element_type=jnp.float32) + fc1b_ref[...]
        hdn = jnp.maximum(hdn, 0.0)                                # ReLU
        out_ref[...] = jnp.dot(hdn.astype(jnp.bfloat16), fc2w_ref[...],
                               preferred_element_type=jnp.float32) + fc2b_ref[...]


# -------------------------------- Wrapper ----------------------------------- #

@jax.jit
def lstm_forward(x, packed):
    """x: (B, T, input_dim) -> (B, 1). Single fused pallas_call, grid over layers."""
    B, T, D = x.shape
    L, HP, _ = packed["wx"].shape
    FH = packed["fc2_wT"].shape[1]

    # Wrapper-side zero-pad D -> HP and time-major flatten: (B, T, D) -> (T*B, HP).
    xt = jnp.transpose(x.astype(jnp.float32), (1, 0, 2))           # (T, B, D)
    xt = jnp.pad(xt, ((0, 0), (0, 0), (0, HP - D))).reshape(T * B, HP)

    # Advisory cost estimate for the XLA scheduler.
    gate_flops = 2 * T * B * HP * (4 * HP)
    flops = L * 2 * gate_flops + 2 * B * HP * FH + 2 * B * FH * FH
    transcendentals = L * T * B * HP * 5
    bytes_accessed = (T * B * HP * 4
                      + packed["wx"].size * 2 + packed["wh"].size * 2
                      + packed["b"].size * 4
                      + packed["fc1_wT"].size * 2 + packed["fc1_b"].size * 4
                      + packed["fc2_wT"].size * 2 + packed["fc2_b"].size * 4
                      + B * FH * 4)

    vmem = pltpu.MemorySpace.VMEM
    grid_spec = pltpu.PrefetchScalarGridSpec(
        num_scalar_prefetch=0,
        grid=(L,),
        in_specs=[
            pl.BlockSpec((T * B, HP), lambda l: (0, 0), memory_space=vmem),
            pl.BlockSpec((1, HP, 4 * HP), lambda l: (l, 0, 0), memory_space=vmem),
            pl.BlockSpec((1, HP, 4 * HP), lambda l: (l, 0, 0), memory_space=vmem),
            pl.BlockSpec((1, 1, 4 * HP), lambda l: (l, 0, 0), memory_space=vmem),
            pl.BlockSpec((HP, FH), lambda l: (0, 0), memory_space=vmem),
            pl.BlockSpec((1, FH), lambda l: (0, 0), memory_space=vmem),
            pl.BlockSpec((FH, FH), lambda l: (0, 0), memory_space=vmem),
            pl.BlockSpec((1, FH), lambda l: (0, 0), memory_space=vmem),
        ],
        out_specs=pl.BlockSpec((B, FH), lambda l: (0, 0), memory_space=vmem),
        scratch_shapes=[pltpu.VMEM((T * B, HP), jnp.float32)],
    )

    out = pl.pallas_call(
        _fused_lstm_model_kernel,
        out_shape=jax.ShapeDtypeStruct((B, FH), jnp.float32),
        grid_spec=grid_spec,
        compiler_params=pltpu.CompilerParams(
            dimension_semantics=("arbitrary",)),       # layers are serially dependent
        cost_estimate=pl.CostEstimate(flops=flops, transcendentals=transcendentals,
                                      bytes_accessed=bytes_accessed),
    )(xt, packed["wx"], packed["wh"], packed["b"], packed["fc1_wT"],
      packed["fc1_b"], packed["fc2_wT"], packed["fc2_b"])

    return out[:, :1]   # column 0 of the lane-dense head output


# --------------------- Parameter init (PyTorch layout) ----------------------- #

def init_params(key, input_dim, hidden_dim, num_layers):
    """PyTorch-shaped parameters: per layer (w_ih (4H,Din), w_hh (4H,H), b_ih, b_hh)."""
    H = hidden_dim * 2                      # LSTM hidden size
    n_lstm_layers = num_layers + 1
    k = 1.0 / jnp.sqrt(H)

    lstm = []
    d_in = input_dim
    for _ in range(n_lstm_layers):
        key, k1, k2, k3, k4 = jax.random.split(key, 5)
        w_ih = jax.random.uniform(k1, (4 * H, d_in), jnp.float32, -k, k)
        w_hh = jax.random.uniform(k2, (4 * H, H), jnp.float32, -k, k)
        b_ih = jax.random.uniform(k3, (4 * H,), jnp.float32, -k, k)
        b_hh = jax.random.uniform(k4, (4 * H,), jnp.float32, -k, k)
        lstm.append((w_ih, w_hh, b_ih, b_hh))
        d_in = H

    key, k1, k2, k3, k4 = jax.random.split(key, 5)
    kf1 = 1.0 / jnp.sqrt(H)
    fc1_w = jax.random.uniform(k1, (hidden_dim, H), jnp.float32, -kf1, kf1)
    fc1_b = jax.random.uniform(k2, (hidden_dim,), jnp.float32, -kf1, kf1)
    kf2 = 1.0 / jnp.sqrt(hidden_dim)
    fc2_w = jax.random.uniform(k3, (1, hidden_dim), jnp.float32, -kf2, kf2)
    fc2_b = jax.random.uniform(k4, (1,), jnp.float32, -kf2, kf2)

    return {"lstm": lstm, "fc1_w": fc1_w, "fc1_b": fc1_b,
            "fc2_w": fc2_w, "fc2_b": fc2_b}


# ------------------ Pack params into fused-kernel layout --------------------- #

def pack_params(params, input_dim, hidden_size):
    """Lane-align, split (x-part / h-part) and bf16-cast weights for the fused kernel.

    Per layer: wx/wh are (HP, 4*HP) with each gate in a 128-aligned column slab
    [g*HP, g*HP+H); unused rows/cols are zero, so padded gate pre-activations are 0
    -> padded h/c columns provably stay 0 and never leak into valid lanes.
    """
    H = hidden_size
    HP = _round_up(H, 128)
    assert input_dim <= HP, "input_dim larger than padded hidden not supported"
    hidden_dim = params["fc1_w"].shape[0]
    FH = _round_up(max(hidden_dim, 1), 128)

    wx_stack, wh_stack, b_stack = [], [], []
    for layer, (w_ih, w_hh, b_ih, b_hh) in enumerate(params["lstm"]):
        d_in = input_dim if layer == 0 else H
        wx = jnp.zeros((HP, 4 * HP), jnp.float32)
        wh = jnp.zeros((HP, 4 * HP), jnp.float32)
        b = jnp.zeros((4 * HP,), jnp.float32)
        bias = b_ih + b_hh
        for g in range(4):
            wx = wx.at[0:d_in, g * HP:g * HP + H].set(w_ih[g * H:(g + 1) * H, :].T)
            wh = wh.at[0:H, g * HP:g * HP + H].set(w_hh[g * H:(g + 1) * H, :].T)
            b = b.at[g * HP:g * HP + H].set(bias[g * H:(g + 1) * H])
        wx_stack.append(wx)
        wh_stack.append(wh)
        b_stack.append(b)

    fc1_wT = jnp.zeros((HP, FH), jnp.float32).at[0:H, 0:hidden_dim].set(params["fc1_w"].T)
    fc1_b = jnp.zeros((FH,), jnp.float32).at[0:hidden_dim].set(params["fc1_b"])
    fc2_wT = jnp.zeros((FH, FH), jnp.float32).at[0:hidden_dim, 0:1].set(params["fc2_w"].T)
    fc2_b = jnp.zeros((FH,), jnp.float32).at[0:1].set(params["fc2_b"])

    return {
        "wx": jnp.stack(wx_stack).astype(jnp.bfloat16),     # (L, HP, 4*HP)
        "wh": jnp.stack(wh_stack).astype(jnp.bfloat16),     # (L, HP, 4*HP)
        "b": jnp.stack(b_stack)[:, None, :],                # (L, 1, 4*HP) f32
        "fc1_wT": fc1_wT.astype(jnp.bfloat16),              # (HP, FH)
        "fc1_b": fc1_b[None, :],                            # (1, FH) f32
        "fc2_wT": fc2_wT.astype(jnp.bfloat16),              # (FH, FH)
        "fc2_b": fc2_b[None, :],                            # (1, FH) f32
    }


# ----------------------------- Pure-JAX reference ---------------------------- #

def lstm_forward_ref(x, params):
    B = x.shape[0]
    xt = jnp.transpose(x, (1, 0, 2))          # (T, B, D)
    for (w_ih, w_hh, b_ih, b_hh) in params["lstm"]:
        H = w_hh.shape[1]
        bias = b_ih + b_hh

        def step(carry, x_t, w_ih=w_ih, w_hh=w_hh, bias=bias, H=H):
            h, c = carry
            gates = x_t @ w_ih.T + h @ w_hh.T + bias
            i = jax.nn.sigmoid(gates[:, 0 * H:1 * H])
            f = jax.nn.sigmoid(gates[:, 1 * H:2 * H])
            g = jnp.tanh(gates[:, 2 * H:3 * H])
            o = jax.nn.sigmoid(gates[:, 3 * H:4 * H])
            c = f * c + i * g
            h = o * jnp.tanh(c)
            return (h, c), h

        init = (jnp.zeros((B, H), jnp.float32), jnp.zeros((B, H), jnp.float32))
        _, xt = jax.lax.scan(step, init, xt)
    h_last = xt[-1]
    h1 = jnp.maximum(h_last @ params["fc1_w"].T + params["fc1_b"], 0.0)
    return h1 @ params["fc2_w"].T + params["fc2_b"]


# ---------------------------------- Main ------------------------------------ #

if __name__ == "__main__":
    INPUT_DIM, HIDDEN_DIM, NUM_LAYERS = 16, 32, 2
    B, T = 2, 8

    key = jax.random.PRNGKey(0)
    key, xk = jax.random.split(key)
    x = jax.random.normal(xk, (B, T, INPUT_DIM), jnp.float32)

    params = init_params(key, INPUT_DIM, HIDDEN_DIM, NUM_LAYERS)
    packed = pack_params(params, INPUT_DIM, HIDDEN_DIM * 2)

    out = lstm_forward(x, packed)
    out = jax.block_until_ready(out)
    assert out.shape == (B, 1), out.shape

    ref = lstm_forward_ref(x, params)
    # bf16 operands (f32 accumulation) compound small quantization error over T=8
    # steps and 3 layers; loosen the f32-reference tolerance accordingly.
    err = jnp.max(jnp.abs(out - ref))
    assert jnp.allclose(out, ref, atol=3e-2, rtol=3e-2), (out, ref, err)

    print("KERNEL_OK")
</pallas_src>

<mosaic_0001>
module attributes {stable_mosaic.version = 11 : i64} {
  func.func @_fused_lstm_model_kernel(%arg0: i32, %arg1: memref<16x128xf32, #tpu.memory_space<vmem>>, %arg2: memref<1x128x512xbf16, #tpu.memory_space<vmem>>, %arg3: memref<1x128x512xbf16, #tpu.memory_space<vmem>>, %arg4: memref<1x1x512xf32, #tpu.memory_space<vmem>>, %arg5: memref<128x128xbf16, #tpu.memory_space<vmem>>, %arg6: memref<1x128xf32, #tpu.memory_space<vmem>>, %arg7: memref<128x128xbf16, #tpu.memory_space<vmem>>, %arg8: memref<1x128xf32, #tpu.memory_space<vmem>>, %arg9: memref<2x128xf32, #tpu.memory_space<vmem>>, %arg10: memref<16x128xf32, #tpu.memory_space<vmem>>) attributes {dimension_semantics = [#tpu.dimension_semantics<arbitrary>], iteration_bounds = array<i64: 3>, scalar_prefetch = 0 : i64, scratch_operands = 1 : i64, tpu.core_type = #tpu.core_type<tc>, window_params = [{pipeline_mode = #tpu.pipeline_mode<synchronous>, transform_indices = @transform_0, window_bounds = array<i64: 16, 128>}, {transform_indices = @transform_1, window_bounds = array<i64: 1, 128, 512>}, {transform_indices = @transform_2, window_bounds = array<i64: 1, 128, 512>}, {transform_indices = @transform_3, window_bounds = array<i64: 1, 1, 512>}, {pipeline_mode = #tpu.pipeline_mode<synchronous>, transform_indices = @transform_4, window_bounds = array<i64: 128, 128>}, {pipeline_mode = #tpu.pipeline_mode<synchronous>, transform_indices = @transform_5, window_bounds = array<i64: 1, 128>}, {pipeline_mode = #tpu.pipeline_mode<synchronous>, transform_indices = @transform_6, window_bounds = array<i64: 128, 128>}, {pipeline_mode = #tpu.pipeline_mode<synchronous>, transform_indices = @transform_7, window_bounds = array<i64: 1, 128>}, {pipeline_mode = #tpu.pipeline_mode<synchronous>, transform_indices = @transform_8, window_bounds = array<i64: 2, 128>}]} {
    %c0_i32 = arith.constant 0 : i32
    %0 = arith.cmpi eq, %arg0, %c0_i32 : i32
    %1 = arith.extui %0 : i1 to i32
    %c0_i32_0 = arith.constant 0 : i32
    %2 = arith.cmpi ne, %1, %c0_i32_0 : i32
    scf.if %2 {
      %c0_55 = arith.constant 0 : index
      %c0_56 = arith.constant 0 : index
      %259 = vector.load %arg1[%c0_55, %c0_56] : memref<16x128xf32, #tpu.memory_space<vmem>>, vector<16x128xf32>
      %c0_57 = arith.constant 0 : index
      %c0_58 = arith.constant 0 : index
      %260 = vector.load %arg10[%c0_57, %c0_58] : memref<16x128xf32, #tpu.memory_space<vmem>>, vector<16x128xf32>
      tpu.vector_store %arg10[%c0_57, %c0_58], %259 {strides = array<i32>} : memref<16x128xf32, #tpu.memory_space<vmem>>, vector<16x128xf32>,
    } else {
    }
    %c0 = arith.constant 0 : index
    %c0_1 = arith.constant 0 : index
    %c0_2 = arith.constant 0 : index
    %3 = vector.load %arg2[%c0, %c0_1, %c0_2] : memref<1x128x512xbf16, #tpu.memory_space<vmem>>, vector<1x128x512xbf16>
    %4 = vector.shape_cast %3 : vector<1x128x512xbf16> to vector<128x512xbf16>
    %c0_3 = arith.constant 0 : index
    %c0_4 = arith.constant 0 : index
    %c0_5 = arith.constant 0 : index
    %5 = vector.load %arg3[%c0_3, %c0_4, %c0_5] : memref<1x128x512xbf16, #tpu.memory_space<vmem>>, vector<1x128x512xbf16>
    %6 = vector.shape_cast %5 : vector<1x128x512xbf16> to vector<128x512xbf16>
    %c0_6 = arith.constant 0 : index
    %c0_7 = arith.constant 0 : index
    %c0_8 = arith.constant 0 : index
    %7 = vector.load %arg4[%c0_6, %c0_7, %c0_8] : memref<1x1x512xf32, #tpu.memory_space<vmem>>, vector<1x1x512xf32>
    %8 = vector.shape_cast %7 : vector<1x1x512xf32> to vector<1x512xf32>
    %c0_9 = arith.constant 0 : index
    %c0_10 = arith.constant 0 : index
    %9 = vector.load %arg10[%c0_9, %c0_10] : memref<16x128xf32, #tpu.memory_space<vmem>>, vector<16x128xf32>
    %10 = arith.truncf %9 : vector<16x128xf32> to vector<16x128xbf16>
    %cst = arith.constant dense<0.000000e+00> : vector<16x512xf32>
    %11 = tpu.matmul %10, %4, %cst {dimension_numbers = #tpu.dot_dimension_numbers<[1], [0], [0], [1], [0, 0, 1, 1], [], []>} : vector<16x128xbf16>, vector<128x512xbf16>, vector<16x512xf32> -> vector<16x512xf32>
    %12 = vector.broadcast %8 : vector<1x512xf32> to vector<16x512xf32>
    %13 = arith.addf %11, %12 : vector<16x512xf32>
    %cst_11 = arith.constant 0.000000e+00 : f32
    %14 = vector.broadcast %cst_11 : f32 to vector<2x128xf32>
    %cst_12 = arith.constant 0.000000e+00 : f32
    %15 = vector.broadcast %cst_12 : f32 to vector<2x128xf32>
    %16 = vector.extract_strided_slice %13 {offsets = [0, 0], sizes = [2, 512], strides = [1, 1]} : vector<16x512xf32> to vector<2x512xf32>
    %17 = arith.truncf %14 : vector<2x128xf32> to vector<2x128xbf16>
    %cst_13 = arith.constant dense<0.000000e+00> : vector<2x512xf32>
    %18 = tpu.matmul %17, %6, %cst_13 {dimension_numbers = #tpu.dot_dimension_numbers<[1], [0], [0], [1], [0, 0, 1, 1], [], []>} : vector<2x128xbf16>, vector<128x512xbf16>, vector<2x512xf32> -> vector<2x512xf32>
    %19 = arith.addf %16, %18 : vector<2x512xf32>
    %20 = vector.extract_strided_slice %19 {offsets = [0, 0], sizes = [2, 128], strides = [1, 1]} : vector<2x512xf32> to vector<2x128xf32>
    %21 = arith.negf %20 : vector<2x128xf32>
    %22 = math.exp %21 : vector<2x128xf32>
    %cst_14 = arith.constant 1.000000e+00 : f32
    %23 = vector.broadcast %cst_14 : f32 to vector<2x128xf32>
    %24 = arith.addf %23, %22 : vector<2x128xf32>
    %25 = arith.divf %23, %24 : vector<2x128xf32>
    %26 = vector.extract_strided_slice %19 {offsets = [0, 128], sizes = [2, 128], strides = [1, 1]} : vector<2x512xf32> to vector<2x128xf32>
    %27 = arith.negf %26 : vector<2x128xf32>
    %28 = math.exp %27 : vector<2x128xf32>
    %cst_15 = arith.constant 1.000000e+00 : f32
    %29 = vector.broadcast %cst_15 : f32 to vector<2x128xf32>
    %30 = arith.addf %29, %28 : vector<2x128xf32>
    %31 = arith.divf %29, %30 : vector<2x128xf32>
    %32 = vector.extract_strided_slice %19 {offsets = [0, 256], sizes = [2, 128], strides = [1, 1]} : vector<2x512xf32> to vector<2x128xf32>
    %33 = math.tanh %32 : vector<2x128xf32>
    %34 = vector.extract_strided_slice %19 {offsets = [0, 384], sizes = [2, 128], strides = [1, 1]} : vector<2x512xf32> to vector<2x128xf32>
    %35 = arith.negf %34 : vector<2x128xf32>
    %36 = math.exp %35 : vector<2x128xf32>
    %cst_16 = arith.constant 1.000000e+00 : f32
    %37 = vector.broadcast %cst_16 : f32 to vector<2x128xf32>
    %38 = arith.addf %37, %36 : vector<2x128xf32>
    %39 = arith.divf %37, %38 : vector<2x128xf32>
    %40 = arith.mulf %31, %15 : vector<2x128xf32>
    %41 = arith.mulf %25, %33 : vector<2x128xf32>
    %42 = arith.addf %40, %41 : vector<2x128xf32>
    %43 = math.tanh %42 : vector<2x128xf32>
    %44 = arith.mulf %39, %43 : vector<2x128xf32>
    %c0_17 = arith.constant 0 : index
    %c0_18 = arith.constant 0 : index
    %45 = vector.load %arg10[%c0_17, %c0_18] : memref<16x128xf32, #tpu.memory_space<vmem>>, vector<2x128xf32>
    tpu.vector_store %arg10[%c0_17, %c0_18], %44 {strides = array<i32>} : memref<16x128xf32, #tpu.memory_space<vmem>>, vector<2x128xf32>,
    %46 = vector.extract_strided_slice %13 {offsets = [2, 0], sizes = [2, 512], strides = [1, 1]} : vector<16x512xf32> to vector<2x512xf32>
    %47 = arith.truncf %44 : vector<2x128xf32> to vector<2x128xbf16>
    %cst_19 = arith.constant dense<0.000000e+00> : vector<2x512xf32>
    %48 = tpu.matmul %47, %6, %cst_19 {dimension_numbers = #tpu.dot_dimension_numbers<[1], [0], [0], [1], [0, 0, 1, 1], [], []>} : vector<2x128xbf16>, vector<128x512xbf16>, vector<2x512xf32> -> vector<2x512xf32>
    %49 = arith.addf %46, %48 : vector<2x512xf32>
    %50 = vector.extract_strided_slice %49 {offsets = [0, 0], sizes = [2, 128], strides = [1, 1]} : vector<2x512xf32> to vector<2x128xf32>
    %51 = arith.negf %50 : vector<2x128xf32>
    %52 = math.exp %51 : vector<2x128xf32>
    %cst_20 = arith.constant 1.000000e+00 : f32
    %53 = vector.broadcast %cst_20 : f32 to vector<2x128xf32>
    %54 = arith.addf %53, %52 : vector<2x128xf32>
    %55 = arith.divf %53, %54 : vector<2x128xf32>
    %56 = vector.extract_strided_slice %49 {offsets = [0, 128], sizes = [2, 128], strides = [1, 1]} : vector<2x512xf32> to vector<2x128xf32>
    %57 = arith.negf %56 : vector<2x128xf32>
    %58 = math.exp %57 : vector<2x128xf32>
    %cst_21 = arith.constant 1.000000e+00 : f32
    %59 = vector.broadcast %cst_21 : f32 to vector<2x128xf32>
    %60 = arith.addf %59, %58 : vector<2x128xf32>
    %61 = arith.divf %59, %60 : vector<2x128xf32>
    %62 = vector.extract_strided_slice %49 {offsets = [0, 256], sizes = [2, 128], strides = [1, 1]} : vector<2x512xf32> to vector<2x128xf32>
    %63 = math.tanh %62 : vector<2x128xf32>
    %64 = vector.extract_strided_slice %49 {offsets = [0, 384], sizes = [2, 128], strides = [1, 1]} : vector<2x512xf32> to vector<2x128xf32>
    %65 = arith.negf %64 : vector<2x128xf32>
    %66 = math.exp %65 : vector<2x128xf32>
    %cst_22 = arith.constant 1.000000e+00 : f32
    %67 = vector.broadcast %cst_22 : f32 to vector<2x128xf32>
    %68 = arith.addf %67, %66 : vector<2x128xf32>
    %69 = arith.divf %67, %68 : vector<2x128xf32>
    %70 = arith.mulf %61, %42 : vector<2x128xf32>
    %71 = arith.mulf %55, %63 : vector<2x128xf32>
    %72 = arith.addf %70, %71 : vector<2x128xf32>
    %73 = math.tanh %72 : vector<2x128xf32>
    %74 = arith.mulf %69, %73 : vector<2x128xf32>
    %c2 = arith.constant 2 : index
    %c0_23 = arith.constant 0 : index
    %75 = vector.load %arg10[%c2, %c0_23] : memref<16x128xf32, #tpu.memory_space<vmem>>, vector<2x128xf32>
    tpu.vector_store %arg10[%c2, %c0_23], %74 {strides = array<i32>} : memref<16x128xf32, #tpu.memory_space<vmem>>, vector<2x128xf32>,
    %76 = vector.extract_strided_slice %13 {offsets = [4, 0], sizes = [2, 512], strides = [1, 1]} : vector<16x512xf32> to vector<2x512xf32>
    %77 = arith.truncf %74 : vector<2x128xf32> to vector<2x128xbf16>
    %cst_24 = arith.constant dense<0.000000e+00> : vector<2x512xf32>
    %78 = tpu.matmul %77, %6, %cst_24 {dimension_numbers = #tpu.dot_dimension_numbers<[1], [0], [0], [1], [0, 0, 1, 1], [], []>} : vector<2x128xbf16>, vector<128x512xbf16>, vector<2x512xf32> -> vector<2x512xf32>
    %79 = arith.addf %76, %78 : vector<2x512xf32>
    %80 = vector.extract_strided_slice %79 {offsets = [0, 0], sizes = [2, 128], strides = [1, 1]} : vector<2x512xf32> to vector<2x128xf32>
    %81 = arith.negf %80 : vector<2x128xf32>
    %82 = math.exp %81 : vector<2x128xf32>
    %cst_25 = arith.constant 1.000000e+00 : f32
    %83 = vector.broadcast %cst_25 : f32 to vector<2x128xf32>
    %84 = arith.addf %83, %82 : vector<2x128xf32>
    %85 = arith.divf %83, %84 : vector<2x128xf32>
    %86 = vector.extract_strided_slice %79 {offsets = [0, 128], sizes = [2, 128], strides = [1, 1]} : vector<2x512xf32> to vector<2x128xf32>
    %87 = arith.negf %86 : vector<2x128xf32>
    %88 = math.exp %87 : vector<2x128xf32>
    %cst_26 = arith.constant 1.000000e+00 : f32
    %89 = vector.broadcast %cst_26 : f32 to vector<2x128xf32>
    %90 = arith.addf %89, %88 : vector<2x128xf32>
    %91 = arith.divf %89, %90 : vector<2x128xf32>
    %92 = vector.extract_strided_slice %79 {offsets = [0, 256], sizes = [2, 128], strides = [1, 1]} : vector<2x512xf32> to vector<2x128xf32>
    %93 = math.tanh %92 : vector<2x128xf32>
    %94 = vector.extract_strided_slice %79 {offsets = [0, 384], sizes = [2, 128], strides = [1, 1]} : vector<2x512xf32> to vector<2x128xf32>
    %95 = arith.negf %94 : vector<2x128xf32>
    %96 = math.exp %95 : vector<2x128xf32>
    %cst_27 = arith.constant 1.000000e+00 : f32
    %97 = vector.broadcast %cst_27 : f32 to vector<2x128xf32>
    %98 = arith.addf %97, %96 : vector<2x128xf32>
    %99 = arith.divf %97, %98 : vector<2x128xf32>
    %100 = arith.mulf %91, %72 : vector<2x128xf32>
    %101 = arith.mulf %85, %93 : vector<2x128xf32>
    %102 = arith.addf %100, %101 : vector<2x128xf32>
    %103 = math.tanh %102 : vector<2x128xf32>
    %104 = arith.mulf %99, %103 : vector<2x128xf32>
    %c4 = arith.constant 4 : index
    %c0_28 = arith.constant 0 : index
    %105 = vector.load %arg10[%c4, %c0_28] : memref<16x128xf32, #tpu.memory_space<vmem>>, vector<2x128xf32>
    tpu.vector_store %arg10[%c4, %c0_28], %104 {strides = array<i32>} : memref<16x128xf32, #tpu.memory_space<vmem>>, vector<2x128xf32>,
    %106 = vector.extract_strided_slice %13 {offsets = [6, 0], sizes = [2, 512], strides = [1, 1]} : vector<16x512xf32> to vector<2x512xf32>
    %107 = arith.truncf %104 : vector<2x128xf32> to vector<2x128xbf16>
    %cst_29 = arith.constant dense<0.000000e+00> : vector<2x512xf32>
    %108 = tpu.matmul %107, %6, %cst_29 {dimension_numbers = #tpu.dot_dimension_numbers<[1], [0], [0], [1], [0, 0, 1, 1], [], []>} : vector<2x128xbf16>, vector<128x512xbf16>, vector<2x512xf32> -> vector<2x512xf32>
    %109 = arith.addf %106, %108 : vector<2x512xf32>
    %110 = vector.extract_strided_slice %109 {offsets = [0, 0], sizes = [2, 128], strides = [1, 1]} : vector<2x512xf32> to vector<2x128xf32>
    %111 = arith.negf %110 : vector<2x128xf32>
    %112 = math.exp %111 : vector<2x128xf32>
    %cst_30 = arith.constant 1.000000e+00 : f32
    %113 = vector.broadcast %cst_30 : f32 to vector<2x128xf32>
    %114 = arith.addf %113, %112 : vector<2x128xf32>
    %115 = arith.divf %113, %114 : vector<2x128xf32>
    %116 = vector.extract_strided_slice %109 {offsets = [0, 128], sizes = [2, 128], strides = [1, 1]} : vector<2x512xf32> to vector<2x128xf32>
    %117 = arith.negf %116 : vector<2x128xf32>
    %118 = math.exp %117 : vector<2x128xf32>
    %cst_31 = arith.constant 1.000000e+00 : f32
    %119 = vector.broadcast %cst_31 : f32 to vector<2x128xf32>
    %120 = arith.addf %119, %118 : vector<2x128xf32>
    %121 = arith.divf %119, %120 : vector<2x128xf32>
    %122 = vector.extract_strided_slice %109 {offsets = [0, 256], sizes = [2, 128], strides = [1, 1]} : vector<2x512xf32> to vector<2x128xf32>
    %123 = math.tanh %122 : vector<2x128xf32>
    %124 = vector.extract_strided_slice %109 {offsets = [0, 384], sizes = [2, 128], strides = [1, 1]} : vector<2x512xf32> to vector<2x128xf32>
    %125 = arith.negf %124 : vector<2x128xf32>
    %126 = math.exp %125 : vector<2x128xf32>
    %cst_32 = arith.constant 1.000000e+00 : f32
    %127 = vector.broadcast %cst_32 : f32 to vector<2x128xf32>
    %128 = arith.addf %127, %126 : vector<2x128xf32>
    %129 = arith.divf %127, %128 : vector<2x128xf32>
    %130 = arith.mulf %121, %102 : vector<2x128xf32>
    %131 = arith.mulf %115, %123 : vector<2x128xf32>
    %132 = arith.addf %130, %131 : vector<2x128xf32>
    %133 = math.tanh %132 : vector<2x128xf32>
    %134 = arith.mulf %129, %133 : vector<2x128xf32>
    %c6 = arith.constant 6 : index
    %c0_33 = arith.constant 0 : index
    %135 = vector.load %arg10[%c6, %c0_33] : memref<16x128xf32, #tpu.memory_space<vmem>>, vector<2x128xf32>
    tpu.vector_store %arg10[%c6, %c0_33], %134 {strides = array<i32>} : memref<16x128xf32, #tpu.memory_space<vmem>>, vector<2x128xf32>,
    %136 = vector.extract_strided_slice %13 {offsets = [8, 0], sizes = [2, 512], strides = [1, 1]} : vector<16x512xf32> to vector<2x512xf32>
    %137 = arith.truncf %134 : vector<2x128xf32> to vector<2x128xbf16>
    %cst_34 = arith.constant dense<0.000000e+00> : vector<2x512xf32>
    %138 = tpu.matmul %137, %6, %cst_34 {dimension_numbers = #tpu.dot_dimension_numbers<[1], [0], [0], [1], [0, 0, 1, 1], [], []>} : vector<2x128xbf16>, vector<128x512xbf16>, vector<2x512xf32> -> vector<2x512xf32>
    %139 = arith.addf %136, %138 : vector<2x512xf32>
    %140 = vector.extract_strided_slice %139 {offsets = [0, 0], sizes = [2, 128], strides = [1, 1]} : vector<2x512xf32> to vector<2x128xf32>
    %141 = arith.negf %140 : vector<2x128xf32>
    %142 = math.exp %141 : vector<2x128xf32>
    %cst_35 = arith.constant 1.000000e+00 : f32
    %143 = vector.broadcast %cst_35 : f32 to vector<2x128xf32>
    %144 = arith.addf %143, %142 : vector<2x128xf32>
    %145 = arith.divf %143, %144 : vector<2x128xf32>
    %146 = vector.extract_strided_slice %139 {offsets = [0, 128], sizes = [2, 128], strides = [1, 1]} : vector<2x512xf32> to vector<2x128xf32>
    %147 = arith.negf %146 : vector<2x128xf32>
    %148 = math.exp %147 : vector<2x128xf32>
    %cst_36 = arith.constant 1.000000e+00 : f32
    %149 = vector.broadcast %cst_36 : f32 to vector<2x128xf32>
    %150 = arith.addf %149, %148 : vector<2x128xf32>
    %151 = arith.divf %149, %150 : vector<2x128xf32>
    %152 = vector.extract_strided_slice %139 {offsets = [0, 256], sizes = [2, 128], strides = [1, 1]} : vector<2x512xf32> to vector<2x128xf32>
    %153 = math.tanh %152 : vector<2x128xf32>
    %154 = vector.extract_strided_slice %139 {offsets = [0, 384], sizes = [2, 128], strides = [1, 1]} : vector<2x512xf32> to vector<2x128xf32>
    %155 = arith.negf %154 : vector<2x128xf32>
    %156 = math.exp %155 : vector<2x128xf32>
    %cst_37 = arith.constant 1.000000e+00 : f32
    %157 = vector.broadcast %cst_37 : f32 to vector<2x128xf32>
    %158 = arith.addf %157, %156 : vector<2x128xf32>
    %159 = arith.divf %157, %158 : vector<2x128xf32>
    %160 = arith.mulf %151, %132 : vector<2x128xf32>
    %161 = arith.mulf %145, %153 : vector<2x128xf32>
    %162 = arith.addf %160, %161 : vector<2x128xf32>
    %163 = math.tanh %162 : vector<2x128xf32>
    %164 = arith.mulf %159, %163 : vector<2x128xf32>
    %c8 = arith.constant 8 : index
    %c0_38 = arith.constant 0 : index
    %165 = vector.load %arg10[%c8, %c0_38] : memref<16x128xf32, #tpu.memory_space<vmem>>, vector<2x128xf32>
    tpu.vector_store %arg10[%c8, %c0_38], %164 {strides = array<i32>} : memref<16x128xf32, #tpu.memory_space<vmem>>, vector<2x128xf32>,
    %166 = vector.extract_strided_slice %13 {offsets = [10, 0], sizes = [2, 512], strides = [1, 1]} : vector<16x512xf32> to vector<2x512xf32>
    %167 = arith.truncf %164 : vector<2x128xf32> to vector<2x128xbf16>
    %cst_39 = arith.constant dense<0.000000e+00> : vector<2x512xf32>
    %168 = tpu.matmul %167, %6, %cst_39 {dimension_numbers = #tpu.dot_dimension_numbers<[1], [0], [0], [1], [0, 0, 1, 1], [], []>} : vector<2x128xbf16>, vector<128x512xbf16>, vector<2x512xf32> -> vector<2x512xf32>
    %169 = arith.addf %166, %168 : vector<2x512xf32>
    %170 = vector.extract_strided_slice %169 {offsets = [0, 0], sizes = [2, 128], strides = [1, 1]} : vector<2x512xf32> to vector<2x128xf32>
    %171 = arith.negf %170 : vector<2x128xf32>
    %172 = math.exp %171 : vector<2x128xf32>
    %cst_40 = arith.constant 1.000000e+00 : f32
    %173 = vector.broadcast %cst_40 : f32 to vector<2x128xf32>
    %174 = arith.addf %173, %172 : vector<2x128xf32>
    %175 = arith.divf %173, %174 : vector<2x128xf32>
    %176 = vector.extract_strided_slice %169 {offsets = [0, 128], sizes = [2, 128], strides = [1, 1]} : vector<2x512xf32> to vector<2x128xf32>
    %177 = arith.negf %176 : vector<2x128xf32>
    %178 = math.exp %177 : vector<2x128xf32>
    %cst_41 = arith.constant 1.000000e+00 : f32
    %179 = vector.broadcast %cst_41 : f32 to vector<2x128xf32>
    %180 = arith.addf %179, %178 : vector<2x128xf32>
    %181 = arith.divf %179, %180 : vector<2x128xf32>
    %182 = vector.extract_strided_slice %169 {offsets = [0, 256], sizes = [2, 128], strides = [1, 1]} : vector<2x512xf32> to vector<2x128xf32>
    %183 = math.tanh %182 : vector<2x128xf32>
    %184 = vector.extract_strided_slice %169 {offsets = [0, 384], sizes = [2, 128], strides = [1, 1]} : vector<2x512xf32> to vector<2x128xf32>
    %185 = arith.negf %184 : vector<2x128xf32>
    %186 = math.exp %185 : vector<2x128xf32>
    %cst_42 = arith.constant 1.000000e+00 : f32
    %187 = vector.broadcast %cst_42 : f32 to vector<2x128xf32>
    %188 = arith.addf %187, %186 : vector<2x128xf32>
    %189 = arith.divf %187, %188 : vector<2x128xf32>
    %190 = arith.mulf %181, %162 : vector<2x128xf32>
    %191 = arith.mulf %175, %183 : vector<2x128xf32>
    %192 = arith.addf %190, %191 : vector<2x128xf32>
    %193 = math.tanh %192 : vector<2x128xf32>
    %194 = arith.mulf %189, %193 : vector<2x128xf32>
    %c10 = arith.constant 10 : index
    %c0_43 = arith.constant 0 : index
    %195 = vector.load %arg10[%c10, %c0_43] : memref<16x128xf32, #tpu.memory_space<vmem>>, vector<2x128xf32>
    tpu.vector_store %arg10[%c10, %c0_43], %194 {strides = array<i32>} : memref<16x128xf32, #tpu.memory_space<vmem>>, vector<2x128xf32>,
    %196 = vector.extract_strided_slice %13 {offsets = [12, 0], sizes = [2, 512], strides = [1, 1]} : vector<16x512xf32> to vector<2x512xf32>
    %197 = arith.truncf %194 : vector<2x128xf32> to vector<2x128xbf16>
    %cst_44 = arith.constant dense<0.000000e+00> : vector<2x512xf32>
    %198 = tpu.matmul %197, %6, %cst_44 {dimension_numbers = #tpu.dot_dimension_numbers<[1], [0], [0], [1], [0, 0, 1, 1], [], []>} : vector<2x128xbf16>, vector<128x512xbf16>, vector<2x512xf32> -> vector<2x512xf32>
    %199 = arith.addf %196, %198 : vector<2x512xf32>
    %200 = vector.extract_strided_slice %199 {offsets = [0, 0], sizes = [2, 128], strides = [1, 1]} : vector<2x512xf32> to vector<2x128xf32>
    %201 = arith.negf %200 : vector<2x128xf32>
    %202 = math.exp %201 : vector<2x128xf32>
    %cst_45 = arith.constant 1.000000e+00 : f32
    %203 = vector.broadcast %cst_45 : f32 to vector<2x128xf32>
    %204 = arith.addf %203, %202 : vector<2x128xf32>
    %205 = arith.divf %203, %204 : vector<2x128xf32>
    %206 = vector.extract_strided_slice %199 {offsets = [0, 128], sizes = [2, 128], strides = [1, 1]} : vector<2x512xf32> to vector<2x128xf32>
    %207 = arith.negf %206 : vector<2x128xf32>
    %208 = math.exp %207 : vector<2x128xf32>
    %cst_46 = arith.constant 1.000000e+00 : f32
    %209 = vector.broadcast %cst_46 : f32 to vector<2x128xf32>
    %210 = arith.addf %209, %208 : vector<2x128xf32>
    %211 = arith.divf %209, %210 : vector<2x128xf32>
    %212 = vector.extract_strided_slice %199 {offsets = [0, 256], sizes = [2, 128], strides = [1, 1]} : vector<2x512xf32> to vector<2x128xf32>
    %213 = math.tanh %212 : vector<2x128xf32>
    %214 = vector.extract_strided_slice %199 {offsets = [0, 384], sizes = [2, 128], strides = [1, 1]} : vector<2x512xf32> to vector<2x128xf32>
    %215 = arith.negf %214 : vector<2x128xf32>
    %216 = math.exp %215 : vector<2x128xf32>
    %cst_47 = arith.constant 1.000000e+00 : f32
    %217 = vector.broadcast %cst_47 : f32 to vector<2x128xf32>
    %218 = arith.addf %217, %216 : vector<2x128xf32>
    %219 = arith.divf %217, %218 : vector<2x128xf32>
    %220 = arith.mulf %211, %192 : vector<2x128xf32>
    %221 = arith.mulf %205, %213 : vector<2x128xf32>
    %222 = arith.addf %220, %221 : vector<2x128xf32>
    %223 = math.tanh %222 : vector<2x128xf32>
    %224 = arith.mulf %219, %223 : vector<2x128xf32>
    %c12 = arith.constant 12 : index
    %c0_48 = arith.constant 0 : index
    %225 = vector.load %arg10[%c12, %c0_48] : memref<16x128xf32, #tpu.memory_space<vmem>>, vector<2x128xf32>
    tpu.vector_store %arg10[%c12, %c0_48], %224 {strides = array<i32>} : memref<16x128xf32, #tpu.memory_space<vmem>>, vector<2x128xf32>,
    %226 = vector.extract_strided_slice %13 {offsets = [14, 0], sizes = [2, 512], strides = [1, 1]} : vector<16x512xf32> to vector<2x512xf32>
    %227 = arith.truncf %224 : vector<2x128xf32> to vector<2x128xbf16>
    %cst_49 = arith.constant dense<0.000000e+00> : vector<2x512xf32>
    %228 = tpu.matmul %227, %6, %cst_49 {dimension_numbers = #tpu.dot_dimension_numbers<[1], [0], [0], [1], [0, 0, 1, 1], [], []>} : vector<2x128xbf16>, vector<128x512xbf16>, vector<2x512xf32> -> vector<2x512xf32>
    %229 = arith.addf %226, %228 : vector<2x512xf32>
    %230 = vector.extract_strided_slice %229 {offsets = [0, 0], sizes = [2, 128], strides = [1, 1]} : vector<2x512xf32> to vector<2x128xf32>
    %231 = arith.negf %230 : vector<2x128xf32>
    %232 = math.exp %231 : vector<2x128xf32>
    %cst_50 = arith.constant 1.000000e+00 : f32
    %233 = vector.broadcast %cst_50 : f32 to vector<2x128xf32>
    %234 = arith.addf %233, %232 : vector<2x128xf32>
    %235 = arith.divf %233, %234 : vector<2x128xf32>
    %236 = vector.extract_strided_slice %229 {offsets = [0, 128], sizes = [2, 128], strides = [1, 1]} : vector<2x512xf32> to vector<2x128xf32>
    %237 = arith.negf %236 : vector<2x128xf32>
    %238 = math.exp %237 : vector<2x128xf32>
    %cst_51 = arith.constant 1.000000e+00 : f32
    %239 = vector.broadcast %cst_51 : f32 to vector<2x128xf32>
    %240 = arith.addf %239, %238 : vector<2x128xf32>
    %241 = arith.divf %239, %240 : vector<2x128xf32>
    %242 = vector.extract_strided_slice %229 {offsets = [0, 256], sizes = [2, 128], strides = [1, 1]} : vector<2x512xf32> to vector<2x128xf32>
    %243 = math.tanh %242 : vector<2x128xf32>
    %244 = vector.extract_strided_slice %229 {offsets = [0, 384], sizes = [2, 128], strides = [1, 1]} : vector<2x512xf32> to vector<2x128xf32>
    %245 = arith.negf %244 : vector<2x128xf32>
    %246 = math.exp %245 : vector<2x128xf32>
    %cst_52 = arith.constant 1.000000e+00 : f32
    %247 = vector.broadcast %cst_52 : f32 to vector<2x128xf32>
    %248 = arith.addf %247, %246 : vector<2x128xf32>
    %249 = arith.divf %247, %248 : vector<2x128xf32>
    %250 = arith.mulf %241, %222 : vector<2x128xf32>
    %251 = arith.mulf %235, %243 : vector<2x128xf32>
    %252 = arith.addf %250, %251 : vector<2x128xf32>
    %253 = math.tanh %252 : vector<2x128xf32>
    %254 = arith.mulf %249, %253 : vector<2x128xf32>
    %c14 = arith.constant 14 : index
    %c0_53 = arith.constant 0 : index
    %255 = vector.load %arg10[%c14, %c0_53] : memref<16x128xf32, #tpu.memory_space<vmem>>, vector<2x128xf32>
    tpu.vector_store %arg10[%c14, %c0_53], %254 {strides = array<i32>} : memref<16x128xf32, #tpu.memory_space<vmem>>, vector<2x128xf32>,
    %c2_i32 = arith.constant 2 : i32
    %256 = arith.cmpi eq, %arg0, %c2_i32 : i32
    %257 = arith.extui %256 : i1 to i32
    %c0_i32_54 = arith.constant 0 : i32
    %258 = arith.cmpi ne, %257, %c0_i32_54 : i32
    scf.if %258 {
      %259 = arith.truncf %254 : vector<2x128xf32> to vector<2x128xbf16>
      %c0_55 = arith.constant 0 : index
      %c0_56 = arith.constant 0 : index
      %260 = vector.load %arg5[%c0_55, %c0_56] : memref<128x128xbf16, #tpu.memory_space<vmem>>, vector<128x128xbf16>
      %cst_57 = arith.constant dense<0.000000e+00> : vector<2x128xf32>
      %261 = tpu.matmul %259, %260, %cst_57 {dimension_numbers = #tpu.dot_dimension_numbers<[1], [0], [0], [1], [0, 0, 1, 1], [], []>} : vector<2x128xbf16>, vector<128x128xbf16>, vector<2x128xf32> -> vector<2x128xf32>
      %c0_58 = arith.constant 0 : index
      %c0_59 = arith.constant 0 : index
      %262 = vector.load %arg6[%c0_58, %c0_59] : memref<1x128xf32, #tpu.memory_space<vmem>>, vector<1x128xf32>
      %263 = vector.broadcast %262 : vector<1x128xf32> to vector<2x128xf32>
      %264 = arith.addf %261, %263 : vector<2x128xf32>
      %cst_60 = arith.constant 0.000000e+00 : f32
      %265 = vector.broadcast %cst_60 : f32 to vector<2x128xf32>
      %266 = arith.maximumf %264, %265 : vector<2x128xf32>
      %267 = arith.truncf %266 : vector<2x128xf32> to vector<2x128xbf16>
      %c0_61 = arith.constant 0 : index
      %c0_62 = arith.constant 0 : index
      %268 = vector.load %arg7[%c0_61, %c0_62] : memref<128x128xbf16, #tpu.memory_space<vmem>>, vector<128x128xbf16>
      %cst_63 = arith.constant dense<0.000000e+00> : vector<2x128xf32>
      %269 = tpu.matmul %267, %268, %cst_63 {dimension_numbers = #tpu.dot_dimension_numbers<[1], [0], [0], [1], [0, 0, 1, 1], [], []>} : vector<2x128xbf16>, vector<128x128xbf16>, vector<2x128xf32> -> vector<2x128xf32>
      %c0_64 = arith.constant 0 : index
      %c0_65 = arith.constant 0 : index
      %270 = vector.load %arg8[%c0_64, %c0_65] : memref<1x128xf32, #tpu.memory_space<vmem>>, vector<1x128xf32>
      %271 = vector.broadcast %270 : vector<1x128xf32> to vector<2x128xf32>
      %272 = arith.addf %269, %271 : vector<2x128xf32>
      %c0_66 = arith.constant 0 : index
      %c0_67 = arith.constant 0 : index
      %273 = vector.load %arg9[%c0_66, %c0_67] : memref<2x128xf32, #tpu.memory_space<vmem>>, vector<2x128xf32>
      tpu.vector_store %arg9[%c0_66, %c0_67], %272 {strides = array<i32>} : memref<2x128xf32, #tpu.memory_space<vmem>>, vector<2x128xf32>,
    } else {
    }
    return
  }
  func.func @transform_0(%arg0: i32) -> (i32, i32) {
    %c0_i32 = arith.constant 0 : i32
    %c0_i32_0 = arith.constant 0 : i32
    %c0_i32_1 = arith.constant 0 : i32
    return %c0_i32, %c0_i32_0 : i32, i32
  }
  func.func @transform_1(%arg0: i32) -> (i32, i32, i32) {
    %c0_i32 = arith.constant 0 : i32
    %c0_i32_0 = arith.constant 0 : i32
    %c0_i32_1 = arith.constant 0 : i32
    return %arg0, %c0_i32, %c0_i32_0 : i32, i32, i32
  }
  func.func @transform_2(%arg0: i32) -> (i32, i32, i32) {
    %c0_i32 = arith.constant 0 : i32
    %c0_i32_0 = arith.constant 0 : i32
    %c0_i32_1 = arith.constant 0 : i32
    return %arg0, %c0_i32, %c0_i32_0 : i32, i32, i32
  }
  func.func @transform_3(%arg0: i32) -> (i32, i32, i32) {
    %c0_i32 = arith.constant 0 : i32
    %c0_i32_0 = arith.constant 0 : i32
    %c0_i32_1 = arith.constant 0 : i32
    return %arg0, %c0_i32, %c0_i32_0 : i32, i32, i32
  }
  func.func @transform_4(%arg0: i32) -> (i32, i32) {
    %c0_i32 = arith.constant 0 : i32
    %c0_i32_0 = arith.constant 0 : i32
    %c0_i32_1 = arith.constant 0 : i32
    return %c0_i32, %c0_i32_0 : i32, i32
  }
  func.func @transform_5(%arg0: i32) -> (i32, i32) {
    %c0_i32 = arith.constant 0 : i32
    %c0_i32_0 = arith.constant 0 : i32
    %c0_i32_1 = arith.constant 0 : i32
    return %c0_i32, %c0_i32_0 : i32, i32
  }
  func.func @transform_6(%arg0: i32) -> (i32, i32) {
    %c0_i32 = arith.constant 0 : i32
    %c0_i32_0 = arith.constant 0 : i32
    %c0_i32_1 = arith.constant 0 : i32
    return %c0_i32, %c0_i32_0 : i32, i32
  }
  func.func @transform_7(%arg0: i32) -> (i32, i32) {
    %c0_i32 = arith.constant 0 : i32
    %c0_i32_0 = arith.constant 0 : i32
    %c0_i32_1 = arith.constant 0 : i32
    return %c0_i32, %c0_i32_0 : i32, i32
  }
  func.func @transform_8(%arg0: i32) -> (i32, i32) {
    %c0_i32 = arith.constant 0 : i32
    %c0_i32_0 = arith.constant 0 : i32
    %c0_i32_1 = arith.constant 0 : i32
    return %c0_i32, %c0_i32_0 : i32, i32
  }
}

</mosaic_0001>

<bundles_post_ra>
// kernel: lstm_forward.1
= control target key start
LH: loop header
LB: loop body
LE: loop exit
PB: predicated region body
PF: predicated region fallthrough
CT: control target
= control target key end

     0   :  { %s3641_s0 = inlined_call_operand.vmem [shape: f32[16,128], index: 0, kind: input, shape index: {}]   ;;  %s3642_s1 = inlined_call_operand.hbm [shape: bf16[3,128,512], index: 1, kind: input, shape index: {}]   ;;  %s3643_s2 = inlined_call_operand.hbm [shape: bf16[3,128,512], index: 2, kind: input, shape index: {}]   ;;  %s3644_s3 = inlined_call_operand.vmem [shape: f32[3,1,512], index: 3, kind: input, shape index: {}]   ;;  %s3645_s4 = inlined_call_operand.vmem [shape: bf16[128,128], index: 4, kind: input, shape index: {}]   ;;  %s3646_s5 = inlined_call_operand.vmem [shape: f32[1,128], index: 5, kind: input, shape index: {}]   ;;  %s3647_s6 = inlined_call_operand.hbm [shape: bf16[128,128], index: 6, kind: input, shape index: {}]   ;;  %s3648_s7 = inlined_call_operand.vmem [shape: f32[1,128], index: 7, kind: input, shape index: {}]   ;;  %s3649_s8 = inlined_call_operand.vmem [shape: f32[2,128], index: 8, kind: output, shape index: {}]  }
   0x1   :  { %3653 = sst [smem:[#allocation11_spill]] %s3642_s1 }
   0x2   :  { %3654 = sst [smem:[#allocation12_spill]] %s3647_s6 }
   0x3   :  { %13 = vsyncpa [#allocation4], 0 }
   0x4   :  { %15 = vsyncpa [#allocation4 + $0x1], 0 }
   0x5   :  { %16 = vsyncpa [#allocation6], 0 }
   0x6   :  { %18 = vsyncpa [#allocation6 + $0x1], 0  ;;  %s2911_s27 = smov 0   ;;  %s2913_s28 = smov 0  }
   0x7   :  { %s2915_s29 = smov 0   ;;  %s2917_s30 = smov 0  }
   0x8 LB: > { %s2930_s9 = sadd.s32 4294967295, %s2854_s30   ;;  %p65_p0 = scmp.ne.s32.totalorder %s2846_s28, %s2842_s27  ;;  %s2854_s30 = sphi %s2917_s30, %s3669_s30   ;;  %s2850_s29 = sphi %s2915_s29, %s3668_s29   ;;  %s2846_s28 = sphi %s2913_s28, %s3667_s28   ;;  %s2842_s27 = sphi %s2911_s27, %s3666_s27  }
   0x9   : > { %p3650_p1 = scmp.eq.s32.totalorder %s2930_s9, 0  ;;  %p2206_p2 = scmp.ge.s32.totalorder %s2854_s30, 1 }
   0xa   : > { %p233_p3 = scmp.lt.s32.totalorder %s2854_s30, 4  ;;  %s2856_s12 = smov [#allocation7]  }
   0xb   : > { %p2939_p5 = por %p3650_p1, %p65_p0  ;;  %s254_s13 = sshll.u32 %s2856_s12, 4  ;;  %s255_s13 = int_to_ptr.vmem [resolvable:$true] %s254_s13 }
   0xc   : > { %p2943_p6 = pnand %p2206_p2, %p233_p3  ;;  %s2956_s15 = sadd.s32 1, %s2854_s30  }
   0xd   : > { %s3655_s10 = scalar_select %p2939_p5, 1, 0 }
   0xe   : > { %s3656_s11 = scalar_select %p2943_p6, 1, 0 }
   0xf   : > { %p2398_p7 = pneg %p2943_p6  ;;  %s52_s16 = sadd.s32 1, %s2850_s29 }
  0x10   : > { %s49_s17 = ssub.s32 %s2854_s30, %s2956_s15  ;;  %s3658_s6 = sld [smem:[#allocation12_spill]] }
  0x11   : > { %p2951_p8 = pnand %p2398_p7, %p3650_p1 }
  0x13   : > { %p2726_p10 = pneg %p2951_p8 }
  0x16   : > { %s2724_s20 = scalar_lea.hbm %s3658_s6, 1024 }
  0x17   : > { %p2725_p9 = scmp.ne.s32.totalorder %s3658_s6, %s2724_s20  ;;  %p2731_p13 = scmp.lt.u32.totalorder %s2724_s20, %s3658_s6 }
  0x19   : > { %p2727_p11 = pnand %p2726_p10, %p2725_p9 }
  0x1b   : > { %p2728_p12 = pneg %p2727_p11 }
  0x1d   : > { %p2733_p0 = pnand %p2731_p13, %p2728_p12 }
  0x1f   : > { %2736 = shalt.err (!%p2733_p0)
}
  0x20   : > { %s2737_s25 = scalar_lea.vmem %s255_s13, 1024  ;;  %p2745_p4 = scmp.lt.s32.totalorder %s255_s13, %s255_s13 }
  0x21   : > { %p2738_p2 = scmp.ne.s32.totalorder %s255_s13, %s2737_s25  ;;  %p2746_p1 = scmp.lt.s32.totalorder %s2737_s25, %s2737_s25 }
  0x23   : > { %p2740_p3 = pnand %p2738_p2, %p2726_p10  ;;  %p2747_p5 = por %p2746_p1, %p2745_p4 }
  0x25   : > { %p2741_p7 = pneg %p2740_p3 }
  0x27   : > { %p2748_p6 = pnand %p2747_p5, %p2741_p7 }
  0x29   : > { %2751 = shalt.err (!%p2748_p6)
}
  0x2a   : > { %s2857_s26 = smov 64   ;;  %s2858_s27 = smov 4  }
  0x2b   : > { %2401 = dma.hbm_to_vmem [thread:$0]  (!%p2951_p8), %s3658_s6, 1024, %s255_s13, [#allocation6], %s2857_s26, %s2857_s26, %s2858_s27  }
  0x2c   : > { %p50_p9 = scmp.eq.s32.totalorder %s49_s17, 0  ;;  %p59_p1 = scmp.ne.s32.totalorder %s2850_s29, %s2846_s28 }
  0x2d   : > { %p60_p4 = scmp.eq.s32.totalorder %s2854_s30, 0  ;;  %p2410_p5 = scmp.lt.s32.totalorder %s2854_s30, 3 }
  0x2e   : > { %s2982_s19 = scalar_select %p50_p9, %s2850_s29, %s52_s16  }
  0x2f   : > { %p61_p6 = por %p60_p4, %p59_p1  ;;  %s271_s20 = sand.u32 1, %s2850_s29  }
  0x30   : > { %s2985_s21 = sshll.u32 %s271_s20, 8  ;;  %s2330_s22 = sshll.u32 %s2854_s30, 12 }
  0x31   : > { %s3659_s1 = sld [smem:[#allocation11_spill]]  ;;  %s275_s13 = scalar_lea.vmem [#allocation3], %s2985_s21 }
  0x32   : > { %s282_s17 = sshll.u32 %s275_s13, 4  ;;  %p2998_p8 = pnand %p2410_p5, %p61_p6  ;;  %s2996_s17 = int_to_ptr.vmem [resolvable:$true] %s282_s17 }
  0x33   : > { %s3002_s25 = scalar_lea.sflag [#allocation4], %s271_s20 }
  0x34   : > { %p2754_p11 = pneg %p2998_p8 }
  0x37   : > { %s2993_s14 = scalar_lea.hbm %s3659_s1, %s2330_s22  ;;  %s2757_s18 = scalar_lea.hbm %s3659_s1, 12288 }
  0x38   : > { %s2752_s26 = scalar_lea.hbm %s2993_s14, 4096  ;;  %p2758_p0 = scmp.lt.u32.totalorder %s2993_s14, %s3659_s1 }
  0x39   : > { %p2753_p10 = scmp.ne.s32.totalorder %s2993_s14, %s2752_s26  ;;  %p2759_p2 = scmp.lt.u32.totalorder %s2757_s18, %s2752_s26 }
  0x3a   : > { %p2761_p7 = scmp.lt.u32.totalorder %s2752_s26, %s2993_s14 }
  0x3b   : > { %p2755_p12 = pnand %p2754_p11, %p2753_p10  ;;  %p2760_p3 = por %p2759_p2, %p2758_p0 }
  0x3d   : > { %p2756_p13 = pneg %p2755_p12  ;;  %p2762_p9 = por %p2761_p7, %p2760_p3 }
  0x3f   : > { %p2763_p1 = pnand %p2762_p9, %p2756_p13 }
  0x41   : > { %2766 = shalt.err (!%p2763_p1)
}
  0x42   : > { %s2767_s20 = scalar_lea.vmem %s2996_s17, 4096  ;;  %s2859_s13 = smov [#allocation3]  }
  0x43   : > { %p2768_p4 = scmp.ne.s32.totalorder %s2996_s17, %s2767_s20  ;;  %s2772_s27 = sshll.u32 %s2859_s13, 4  ;;  %s2773_s27 = int_to_ptr.vmem [resolvable:$false] %s2772_s27 }
  0x44   : > { %s2774_s12 = scalar_lea.vmem %s2773_s27, 8192  ;;  %p2775_p10 = scmp.lt.s32.totalorder %s2996_s17, %s2773_s27 }
  0x45   : > { %p2770_p5 = pnand %p2768_p4, %p2754_p11  ;;  %p2776_p12 = scmp.lt.s32.totalorder %s2774_s12, %s2767_s20 }
  0x47   : > { %p2771_p6 = pneg %p2770_p5  ;;  %p2777_p0 = por %p2776_p12, %p2775_p10 }
  0x49   : > { %p2778_p2 = pnand %p2777_p0, %p2771_p6 }
  0x4b   : > { %2781 = shalt.err (!%p2778_p2)
}
  0x4c   : > { %s2860_s26 = smov 256   ;;  %s2861_s18 = smov 16  }
  0x4d   : > { %2405 = dma.hbm_to_vmem [thread:$0]  (!%p2998_p8), %s2993_s14, 4096, %s2996_s17, %s3002_s25, %s2860_s26, %s2860_s26, %s2861_s18  }
  0x4e   : > { %s3038_s20 = scalar_lea.hbm %s3643_s2, %s2330_s22  ;;  %s296_s13 = scalar_lea.vmem [#allocation5], %s2985_s21 }
  0x4f   : > { %s303_s27 = sshll.u32 %s296_s13, 4  ;;  %s292_s12 = sand.u32 1, %s2854_s30   ;;  %s3041_s27 = int_to_ptr.vmem [resolvable:$true] %s303_s27 }
  0x50   : > { %s3044_s1 = scalar_lea.sflag [#allocation6], %s292_s12  ;;  %s2782_s6 = scalar_lea.hbm %s3038_s20, 4096 }
  0x51   : > { %p2783_p13 = scmp.ne.s32.totalorder %s3038_s20, %s2782_s6  ;;  %s2787_s17 = scalar_lea.hbm %s3643_s2, 12288 }
  0x52   : > { %p2788_p9 = scmp.lt.u32.totalorder %s3038_s20, %s3643_s2  ;;  %p2789_p1 = scmp.lt.u32.totalorder %s2787_s17, %s2782_s6 }
  0x53   : > { %p2785_p3 = pnand %p2783_p13, %p2754_p11  ;;  %p2791_p5 = scmp.lt.u32.totalorder %s2782_s6, %s3038_s20 }
  0x54   : > { %p2790_p4 = por %p2789_p1, %p2788_p9 }
  0x55   : > { %p2786_p7 = pneg %p2785_p3 }
  0x56   : > { %p2792_p6 = por %p2791_p5, %p2790_p4 }
  0x58   : > { %p2793_p10 = pnand %p2792_p6, %p2786_p7 }
  0x5a   : > { %2796 = shalt.err (!%p2793_p10)
}
  0x5b   : > { %s2797_s30 = scalar_lea.vmem %s3041_s27, 4096  ;;  %s2862_s21 = smov [#allocation5]  }
  0x5c   : > { %p2798_p12 = scmp.ne.s32.totalorder %s3041_s27, %s2797_s30  ;;  %s2802_s24 = sshll.u32 %s2862_s21, 4  ;;  %s2803_s24 = int_to_ptr.vmem [resolvable:$false] %s2802_s24 }
  0x5d   : > { %s2804_s13 = scalar_lea.vmem %s2803_s24, 8192  ;;  %p2805_p13 = scmp.lt.s32.totalorder %s3041_s27, %s2803_s24 }
  0x5e   : > { %p2800_p0 = pnand %p2798_p12, %p2754_p11  ;;  %p2806_p3 = scmp.lt.s32.totalorder %s2804_s13, %s2797_s30 }
  0x60   : > { %p2801_p2 = pneg %p2800_p0  ;;  %p2807_p9 = por %p2806_p3, %p2805_p13 }
  0x62   : > { %p2808_p1 = pnand %p2807_p9, %p2801_p2 }
  0x64   : > { %2811 = shalt.err (!%p2808_p1)
}
  0x65   : > { %2408 = dma.hbm_to_vmem [thread:$0]  (!%p2998_p8), %s3038_s20, 4096, %s3041_s27, %s3044_s1, %s2860_s26, %s2860_s26, %s2861_s18  }
  0x66   : > { %p3661_p11 = scmp.ne.s32.totalorder %s3656_s11, 0 }
  0x67   : > { %s324_s6 = sand.u32 (!%p3661_p11), 1, %s2846_s28   ;;  %p3662_p7 = scmp.ne.s32.totalorder (!%p3661_p11), %s3655_s10, 0 }
  0x68   : > { %322 = sbr.rel (%p3661_p11) target bundleno = 2731 (0xaab), region = 52  ;;  %s2216_s12 = sshll.u32 (!%p3661_p11), %s324_s6, 8 }
  0x69   : > { %s325_s14 = scalar_lea.sflag (!%p3661_p11), [#allocation4], %s324_s6  ;;  %s3076_s22 = scalar_lea.vmem (!%p3661_p11), [#allocation3], %s2216_s12 }
  0x6f   : > { %2829 = dma.done.wait (%p3662_p7), %s325_s14, 4096  }
  0x70   : > { %2831 = vsyncadd (%p3662_p7), %s325_s14, 4294963200  ;;  %s333_s16 = sand.u32 1, %s2930_s9   ;;  %s3083_s1 = scalar_lea.vmem [#allocation5], %s2216_s12 }
  0x71   : > { %s334_s17 = scalar_lea.sflag [#allocation6], %s333_s16 }
  0x72   : > { %2833 = dma.done.wait (%p3662_p7), %s334_s17, 4096  }
  0x73   : > { %2835 = vsyncadd (%p3662_p7), %s334_s17, 4294963200  ;;  %p3663_p8 = scmp.eq.s32.totalorder %s2930_s9, 0 }
  0x75   : > { %2837 = dma.done.wait (%p3663_p8), [#allocation6], 1024   ;;  %p3664_p4 = pmov %p3663_p8 }
  0x76   : > { %p378_p5 = scmp.lt.s32.totalorder %s2930_s9, 2  ;;  %p3665_p6 = scmp.ne.s32.totalorder %s2930_s9, 0 }
  0x77   : > { %2839 = vsyncadd (%p3664_p4), [#allocation6], 4294966272  ;;  %v387_v0 = vld [vmem:[%s3641_s0] sm:$0xff] (!%p3665_p6)  ;;  %v388_v1 = vld [vmem:[%s3641_s0 + $0x8] sm:$0xff] (!%p3665_p6) }
  0x78   : > { %s379_s11 = scalar_select %p378_p5, %s2930_s9, 2 }
  0x79   : > { %386 = sbr.rel (%p3665_p6) target bundleno = 128 (0x80), region = 68  ;;  %389 = vst [vmem:[#allocation2] sm:$0xff] (!%p3665_p6), %v387_v0  ;;  %390 = vst [vmem:[#allocation2 + $0x8] sm:$0xff] (!%p3665_p6), %v388_v1 }
  0x7a   : > { %s2219_s26 = sshll.u32 %s379_s11, 2 }
  0x7b   : > { %s3098_s27 = scalar_lea.vmem %s3644_s3, %s2219_s26 }
  0x80 PF: > { %v2452_v2 = vld [vmem:[%s3076_s22 + $0x4] ss:$16 sps:$4 sm:$0xff]   ;;  %v2454_v3 = vld [vmem:[%s3076_s22 + $0xc] ss:$16 sps:$4 sm:$0xff]   ;;  %v2863_v4 = vmov 0   ;;  %p2309_p10 = scmp.ne.s32.totalorder %s2930_s9, 2 }
  0x81   : > { %672 = vmatprep.mubr.bf16.mxu0 %v2863_v4  ;;  %715 = vmatprep.mubr.bf16.mxu1 %v2863_v4  ;;  %v2456_v5 = vld [vmem:[%s3076_s22] ss:$16 sps:$4 sm:$0xff]   ;;  %v2457_v6 = vld [vmem:[%s3076_s22 + $0x8] ss:$16 sps:$4 sm:$0xff]   ;;  %v2458_v7 = vld [vmem:[%s3076_s22 + $0x24] ss:$16 sps:$4 sm:$0xff]  }
  0x82   : > { %640 = vmatprep.subr.bf16.mxu0 %v2452_v2  ;;  %683 = vmatprep.subr.bf16.mxu1 %v2454_v3  ;;  %v2460_v8 = vld [vmem:[%s3076_s22 + $0x2c] ss:$16 sps:$4 sm:$0xff]   ;;  %v2462_v9 = vld [vmem:[%s3076_s22 + $0x20] ss:$16 sps:$4 sm:$0xff]   ;;  %v2463_v10 = vld [vmem:[%s3076_s22 + $0x28] ss:$16 sps:$4 sm:$0xff]  }
  0x83   : > { %641 = vmatpush1.bf16.msra.mxu0 %v2456_v5  ;;  %684 = vmatpush1.bf16.msra.mxu1 %v2457_v6  ;;  %v2464_v11 = vld [vmem:[%s3076_s22 + $0x44] ss:$16 sps:$4 sm:$0xff]   ;;  %v2466_v12 = vld [vmem:[%s3076_s22 + $0x4c] ss:$16 sps:$4 sm:$0xff]   ;;  %v2468_v13 = vld [vmem:[%s3076_s22 + $0x40] ss:$16 sps:$4 sm:$0xff]  }
  0x84   : > { %642 = vmatprep.subr.bf16.mxu0 %v2458_v7  ;;  %685 = vmatprep.subr.bf16.mxu1 %v2460_v8  ;;  %v2469_v14 = vld [vmem:[%s3076_s22 + $0x48] ss:$16 sps:$4 sm:$0xff]   ;;  %v2470_v15 = vld [vmem:[%s3076_s22 + $0x64] ss:$16 sps:$4 sm:$0xff]   ;;  %v2472_v16 = vld [vmem:[%s3076_s22 + $0x6c] ss:$16 sps:$4 sm:$0xff]   ;;  %v460_v7 = vlaneseq }
  0x85   : > { %v2474_v17 = vld [vmem:[%s3076_s22 + $0x60] ss:$16 sps:$4 sm:$0xff]   ;;  %v2475_v18 = vld [vmem:[%s3076_s22 + $0x68] ss:$16 sps:$4 sm:$0xff]   ;;  %v2476_v19 = vld [vmem:[%s3076_s22 + $0x84] ss:$16 sps:$4 sm:$0xff]  }
  0x86   : > { %v2478_v20 = vld [vmem:[%s3076_s22 + $0x8c] ss:$16 sps:$4 sm:$0xff]   ;;  %v2480_v21 = vld [vmem:[%s3076_s22 + $0x80] ss:$16 sps:$4 sm:$0xff]   ;;  %v2481_v22 = vld [vmem:[%s3076_s22 + $0x88] ss:$16 sps:$4 sm:$0xff]  }
  0x87   : > { %643 = vmatpush1.bf16.msra.mxu0 %v2462_v9  ;;  %686 = vmatpush1.bf16.msra.mxu1 %v2463_v10  ;;  %v2482_v23 = vld [vmem:[%s3076_s22 + $0xa4] ss:$16 sps:$4 sm:$0xff]   ;;  %v2484_v24 = vld [vmem:[%s3076_s22 + $0xac] ss:$16 sps:$4 sm:$0xff]   ;;  %v2486_v25 = vld [vmem:[%s3076_s22 + $0xa0] ss:$16 sps:$4 sm:$0xff]  }
  0x88   : > { %644 = vmatprep.subr.bf16.mxu0 %v2464_v11  ;;  %687 = vmatprep.subr.bf16.mxu1 %v2466_v12  ;;  %v2487_v26 = vld [vmem:[%s3076_s22 + $0xa8] ss:$16 sps:$4 sm:$0xff]   ;;  %v2488_v27 = vld [vmem:[%s3076_s22 + $0xc4] ss:$16 sps:$4 sm:$0xff]   ;;  %v2490_v28 = vld [vmem:[%s3076_s22 + $0xcc] ss:$16 sps:$4 sm:$0xff]  }
  0x89   : > { %v2492_v29 = vld [vmem:[%s3076_s22 + $0xc0] ss:$16 sps:$4 sm:$0xff]   ;;  %v2493_v30 = vld [vmem:[%s3076_s22 + $0xc8] ss:$16 sps:$4 sm:$0xff]   ;;  %v2494_v31 = vld [vmem:[%s3076_s22 + $0xe4] ss:$16 sps:$4 sm:$0xff]  }
  0x8a   : > { %v2496_v32 = vld [vmem:[%s3076_s22 + $0xec] ss:$16 sps:$4 sm:$0xff]   ;;  %v2498_v33 = vld [vmem:[%s3076_s22 + $0xe0] ss:$16 sps:$4 sm:$0xff]   ;;  %v2499_v34 = vld [vmem:[%s3076_s22 + $0xe8] ss:$16 sps:$4 sm:$0xff]  }
  0x8b   : > { %645 = vmatpush1.bf16.msra.mxu0 %v2468_v13  ;;  %688 = vmatpush1.bf16.msra.mxu1 %v2469_v14  ;;  %v456_v35 = vld [vmem:[#allocation2] sm:$0xff]  ;;  %v457_v36 = vld [vmem:[#allocation2 + $0x8] sm:$0xff]  ;;  %v461_v8 = vshrl.u32 %v460_v7, 7  ;;  %vm2865_vm0 = vmmov (!%p2309_p10), 0  }
  0x8c   : > { %646 = vmatprep.subr.bf16.mxu0 %v2470_v15  ;;  %689 = vmatprep.subr.bf16.mxu1 %v2472_v16  ;;  %v3143_v37 = vld [vmem:[%s3083_s1 + $0x4] ss:$16 sps:$4 sm:$0xff]   ;;  %v3146_v38 = vld [vmem:[%s3083_s1 + $0xc] ss:$16 sps:$4 sm:$0xff]   ;;  %v458_v39 = vpack.c.bf16 %v457_v36, %v456_v35  ;;  %v3149_v40 = vld [vmem:[%s3083_s1] ss:$16 sps:$4 sm:$0xff]  }
  0x8d   : > { %v3152_v41 = vld [vmem:[%s3083_s1 + $0x8] ss:$16 sps:$4 sm:$0xff]   ;;  %v3155_v42 = vld [vmem:[%s3083_s1 + $0x24] ss:$16 sps:$4 sm:$0xff]   ;;  %v3160_v43 = vld [vmem:[%s3083_s1 + $0x2c] ss:$16 sps:$4 sm:$0xff]  }
  0x8e   : > { %v3163_v44 = vld [vmem:[%s3083_s1 + $0x20] ss:$16 sps:$4 sm:$0xff]   ;;  %v3168_v45 = vld [vmem:[%s3083_s1 + $0x28] ss:$16 sps:$4 sm:$0xff]   ;;  %v3173_v46 = vld [vmem:[%s3083_s1 + $0x44] ss:$16 sps:$4 sm:$0xff]  }
  0x8f   : > { %647 = vmatpush1.bf16.msra.mxu0 %v2474_v17  ;;  %690 = vmatpush1.bf16.msra.mxu1 %v2475_v18  ;;  %v3176_v47 = vld [vmem:[%s3083_s1 + $0x4c] ss:$16 sps:$4 sm:$0xff]   ;;  %v3181_v48 = vld [vmem:[%s3083_s1 + $0x40] ss:$16 sps:$4 sm:$0xff]   ;;  %v3186_v49 = vld [vmem:[%s3083_s1 + $0x48] ss:$16 sps:$4 sm:$0xff]  }
  0x90   : > { %648 = vmatprep.subr.bf16.mxu0 %v2476_v19  ;;  %691 = vmatprep.subr.bf16.mxu1 %v2478_v20  ;;  %v3189_v50 = vld [vmem:[%s3083_s1 + $0x64] ss:$16 sps:$4 sm:$0xff]   ;;  %v3194_v51 = vld [vmem:[%s3083_s1 + $0x6c] ss:$16 sps:$4 sm:$0xff]   ;;  %v3199_v52 = vld [vmem:[%s3083_s1 + $0x60] ss:$16 sps:$4 sm:$0xff]  }
  0x91   : > { %v3202_v53 = vld [vmem:[%s3083_s1 + $0x68] ss:$16 sps:$4 sm:$0xff]   ;;  %v3207_v54 = vld [vmem:[%s3083_s1 + $0x84] ss:$16 sps:$4 sm:$0xff]   ;;  %v3210_v55 = vld [vmem:[%s3083_s1 + $0x8c] ss:$16 sps:$4 sm:$0xff]  }
  0x92   : > { %v3215_v56 = vld [vmem:[%s3083_s1 + $0x80] ss:$16 sps:$4 sm:$0xff]   ;;  %v3218_v57 = vld [vmem:[%s3083_s1 + $0x88] ss:$16 sps:$4 sm:$0xff]   ;;  %v3223_v58 = vld [vmem:[%s3083_s1 + $0xa4] ss:$16 sps:$4 sm:$0xff]  }
  0x93   : > { %649 = vmatpush1.bf16.msra.mxu0 %v2480_v21  ;;  %692 = vmatpush1.bf16.msra.mxu1 %v2481_v22  ;;  %v3226_v59 = vld [vmem:[%s3083_s1 + $0xac] ss:$16 sps:$4 sm:$0xff]   ;;  %v3231_v60 = vld [vmem:[%s3083_s1 + $0xa0] ss:$16 sps:$4 sm:$0xff]   ;;  %v3234_v61 = vld [vmem:[%s3083_s1 + $0xa8] ss:$16 sps:$4 sm:$0xff]  }
  0x94   : > { %650 = vmatprep.subr.bf16.mxu0 %v2482_v23  ;;  %693 = vmatprep.subr.bf16.mxu1 %v2484_v24  ;;  %v3239_v62 = vld [vmem:[%s3083_s1 + $0xc4] ss:$16 sps:$4 sm:$0xff]   ;;  %v3242_v63 = vld [vmem:[%s3083_s1 + $0xcc] ss:$16 sps:$4 sm:$0xff]   ;;  %v3247_v0 = vld [vmem:[%s3083_s1 + $0xc0] ss:$16 sps:$4 sm:$0xff]  }
  0x95   : > { %v3250_v1 = vld [vmem:[%s3083_s1 + $0xc8] ss:$16 sps:$4 sm:$0xff]   ;;  %v3255_v2 = vld [vmem:[%s3083_s1 + $0xe4] ss:$16 sps:$4 sm:$0xff]   ;;  %v3258_v3 = vld [vmem:[%s3083_s1 + $0xec] ss:$16 sps:$4 sm:$0xff]  }
  0x96   : > { %v3263_v5 = vld [vmem:[%s3083_s1 + $0xe0] ss:$16 sps:$4 sm:$0xff]   ;;  %v3266_v6 = vld [vmem:[%s3083_s1 + $0xe8] ss:$16 sps:$4 sm:$0xff]   ;;  %v462_v9 = vsub.s32 0, %v461_v8  ;;  %v470_v10 = vsub.s32 2, %v461_v8 }
  0x97   : > { %651 = vmatpush1.bf16.msra.mxu0 %v2486_v25  ;;  %694 = vmatpush1.bf16.msra.mxu1 %v2487_v26  ;;  %v455_v11 = vld [vmem:[%s3098_s27] sm:$0xf]  ;;  %v474_v12 = vsub.s32 3, %v461_v8  ;;  %v466_v13 = vsub.s32 1, %v461_v8 }
  0x98   : > { %652 = vmatprep.subr.bf16.mxu0 %v2488_v27  ;;  %695 = vmatprep.subr.bf16.mxu1 %v2490_v28  ;;  %v463_v14 = vrot.slane %v455_v11, %v462_v9  ;;  %v471_v15 = vrot.slane %v455_v11, %v470_v10 }
  0x99   : > { %v475_v18 = vrot.slane %v455_v11, %v474_v12  ;;  %v467_v21 = vrot.slane %v455_v11, %v466_v13 }
  0x9b   : > { %653 = vmatpush1.bf16.msra.mxu0 %v2492_v29  ;;  %696 = vmatpush1.bf16.msra.mxu1 %v2493_v30 }
  0x9c   : > { %654 = vmatprep.subr.bf16.mxu0 %v2494_v31  ;;  %697 = vmatprep.subr.bf16.mxu1 %v2496_v32 }
  0x9f   : > { %655 = vmatpush1.bf16.msra.mxu0 %v2498_v33  ;;  %698 = vmatpush1.bf16.msra.mxu1 %v2499_v34 }
  0xa0   : > { %886 = vmatprep.subr.bf16.mxu0 %v3143_v37  ;;  %927 = vmatprep.subr.bf16.mxu1 %v3146_v38 }
  0xa2   : > { %673 = vmatmul.mubr.bf16.vlgmr.msra.gmra.mrb[0].mxu0 %v458_v39  ;;  %716 = vmatmul.mubr.bf16.vlgmr.msra.gmra.mrb[0].mxu1 %v458_v39 }
  0xa3   : > { %887 = vmatpush1.bf16.msra.mxu0 %v3149_v40  ;;  %928 = vmatpush1.bf16.msra.mxu1 %v3152_v41 }
  0xa4   : > { %888 = vmatprep.subr.bf16.mxu0 %v3155_v42  ;;  %929 = vmatprep.subr.bf16.mxu1 %v3160_v43 }
  0xa5   : > { %918 = vmatprep.mubr.bf16.mxu0 %v2863_v4  ;;  %959 = vmatprep.mubr.bf16.mxu1 %v2863_v4 }
  0xa7   : > { %889 = vmatpush1.bf16.msra.mxu0 %v3163_v44  ;;  %930 = vmatpush1.bf16.msra.mxu1 %v3168_v45 }
  0xa8   : > { %890 = vmatprep.subr.bf16.mxu0 %v3173_v46  ;;  %931 = vmatprep.subr.bf16.mxu1 %v3176_v47 }
  0xab   : > { %891 = vmatpush1.bf16.msra.mxu0 %v3181_v48  ;;  %932 = vmatpush1.bf16.msra.mxu1 %v3186_v49 }
  0xac   : > { %892 = vmatprep.subr.bf16.mxu0 %v3189_v50  ;;  %933 = vmatprep.subr.bf16.mxu1 %v3194_v51 }
  0xaf   : > { %893 = vmatpush1.bf16.msra.mxu0 %v3199_v52  ;;  %934 = vmatpush1.bf16.msra.mxu1 %v3202_v53 }
  0xb0   : > { %894 = vmatprep.subr.bf16.mxu0 %v3207_v54  ;;  %935 = vmatprep.subr.bf16.mxu1 %v3210_v55 }
  0xb3   : > { %895 = vmatpush1.bf16.msra.mxu0 %v3215_v56  ;;  %936 = vmatpush1.bf16.msra.mxu1 %v3218_v57 }
  0xb4   : > { %896 = vmatprep.subr.bf16.mxu0 %v3223_v58  ;;  %937 = vmatprep.subr.bf16.mxu1 %v3226_v59 }
  0xb7   : > { %897 = vmatpush1.bf16.msra.mxu0 %v3231_v60  ;;  %938 = vmatpush1.bf16.msra.mxu1 %v3234_v61 }
  0xb8   : > { %898 = vmatprep.subr.bf16.mxu0 %v3239_v62  ;;  %939 = vmatprep.subr.bf16.mxu1 %v3242_v63 }
  0xbb   : > { %899 = vmatpush1.bf16.msra.mxu0 %v3247_v0  ;;  %940 = vmatpush1.bf16.msra.mxu1 %v3250_v1 }
  0xbc   : > { %900 = vmatprep.subr.bf16.mxu0 %v3255_v2  ;;  %941 = vmatprep.subr.bf16.mxu1 %v3258_v3 }
  0xbf   : > { %901 = vmatpush1.bf16.msra.mxu0 %v3263_v5  ;;  %942 = vmatpush1.bf16.msra.mxu1 %v3266_v6 }
  0xc0   : > { %998 = vmatprep.subr.bf16.mxu0 %v3143_v37  ;;  %1039 = vmatprep.subr.bf16.mxu1 %v3146_v38 }
  0xc2   : > { %919 = vmatmul.mubr.bf16.vlgmr.msra.gmra.mrb[4].mxu0 %v2863_v4  ;;  %960 = vmatmul.mubr.bf16.vlgmr.msra.gmra.mrb[4].mxu1 %v2863_v4 }
  0xc3   : > { %999 = vmatpush1.bf16.msra.mxu0 %v3149_v40  ;;  %1040 = vmatpush1.bf16.msra.mxu1 %v3152_v41 }
  0xc4   : > { %1000 = vmatprep.subr.bf16.mxu0 %v3155_v42  ;;  %1041 = vmatprep.subr.bf16.mxu1 %v3160_v43 }
  0xc5   : > { %1030 = vmatprep.mubr.bf16.mxu0 %v2863_v4  ;;  %1071 = vmatprep.mubr.bf16.mxu1 %v2863_v4 }
  0xc7   : > { %1001 = vmatpush1.bf16.msra.mxu0 %v3163_v44  ;;  %1042 = vmatpush1.bf16.msra.mxu1 %v3168_v45 }
  0xc8   : > { %1002 = vmatprep.subr.bf16.mxu0 %v3173_v46  ;;  %1043 = vmatprep.subr.bf16.mxu1 %v3176_v47 }
  0xcb   : > { %1003 = vmatpush1.bf16.msra.mxu0 %v3181_v48  ;;  %1044 = vmatpush1.bf16.msra.mxu1 %v3186_v49 }
  0xcc   : > { %1004 = vmatprep.subr.bf16.mxu0 %v3189_v50  ;;  %1045 = vmatprep.subr.bf16.mxu1 %v3194_v51 }
  0xcf   : > { %1005 = vmatpush1.bf16.msra.mxu0 %v3199_v52  ;;  %1046 = vmatpush1.bf16.msra.mxu1 %v3202_v53 }
  0xd0   : > { %1006 = vmatprep.subr.bf16.mxu0 %v3207_v54  ;;  %1047 = vmatprep.subr.bf16.mxu1 %v3210_v55 }
  0xd3   : > { %1007 = vmatpush1.bf16.msra.mxu0 %v3215_v56  ;;  %1048 = vmatpush1.bf16.msra.mxu1 %v3218_v57 }
  0xd4   : > { %1008 = vmatprep.subr.bf16.mxu0 %v3223_v58  ;;  %1049 = vmatprep.subr.bf16.mxu1 %v3226_v59 }
  0xd7   : > { %1009 = vmatpush1.bf16.msra.mxu0 %v3231_v60  ;;  %1050 = vmatpush1.bf16.msra.mxu1 %v3234_v61 }
  0xd8   : > { %1010 = vmatprep.subr.bf16.mxu0 %v3239_v62  ;;  %1051 = vmatprep.subr.bf16.mxu1 %v3242_v63 }
  0xdb   : > { %1011 = vmatpush1.bf16.msra.mxu0 %v3247_v0  ;;  %1052 = vmatpush1.bf16.msra.mxu1 %v3250_v1 }
  0xdc   : > { %1012 = vmatprep.subr.bf16.mxu0 %v3255_v2  ;;  %1053 = vmatprep.subr.bf16.mxu1 %v3258_v3 }
  0xdf   : > { %1013 = vmatpush1.bf16.msra.mxu0 %v3263_v5  ;;  %1054 = vmatpush1.bf16.msra.mxu1 %v3266_v6 }
  0xe0   : > { %1128 = vmatprep.subr.bf16.mxu0 %v3143_v37  ;;  %1169 = vmatprep.subr.bf16.mxu1 %v3146_v38 }
 0x175   : > { %v674_v16 = vpop.f32.mrb[0].mxu0  ;;  %v717_v17 = vpop.f32.mrb[0].mxu1 }
 0x176   : > { %v676_v19 = vpop.f32.mrb[1].mxu0  ;;  %v719_v20 = vpop.f32.mrb[1].mxu1  ;;  %v3319_v30 = vadd.f32 %v674_v16, %v463_v14  ;;  %v3328_v16 = vadd.f32 %v717_v17, %v471_v15 }
 0x177   : > { %v678_v22 = vpop.f32.mrb[2].mxu0  ;;  %v721_v23 = vpop.f32.mrb[2].mxu1  ;;  %v3321_v31 = vadd.f32 %v676_v19, %v467_v21  ;;  %v3325_v13 = vadd.f32 %v719_v20, %v475_v18 }
 0x178   : > { %v3311_v24 = vadd.f32 %v678_v22, %v463_v14  ;;  %v680_v25 = vpop.f32.mrb[3].mxu0  ;;  %v3313_v26 = vadd.f32 %v721_v23, %v471_v15  ;;  %v723_v27 = vpop.f32.mrb[3].mxu1 }
 0x179   : > { %v3315_v28 = vadd.f32 %v680_v25, %v467_v21  ;;  %v3317_v29 = vadd.f32 %v723_v27, %v475_v18 }
 0x195   : > { %v920_v32 = vpop.f32.mrb[4].mxu0  ;;  %v961_v33 = vpop.f32.mrb[4].mxu1 }
 0x196   : > { %v968_v34 = vadd.f32 %v920_v32, %v3319_v30  ;;  %v922_v35 = vpop.f32.mrb[5].mxu0  ;;  %v963_v36 = vpop.f32.mrb[5].mxu1  ;;  %v970_v21 = vadd.f32 %v961_v33, %v3328_v16 }
 0x197   : > { %v969_v39 = vadd.f32 %v922_v35, %v3321_v31  ;;  %v924_v7 = vpop.f32.mrb[6].mxu0  ;;  %v965_v8 = vpop.f32.mrb[6].mxu1  ;;  %v971_v14 = vadd.f32 %v963_v36, %v3325_v13 }
 0x198   : > { %v2285_v9 = vmul.f32 -1.442695, %v968_v34  ;;  %v925_v10 = vpop.f32.mrb[7].mxu0  ;;  %v966_v11 = vpop.f32.mrb[7].mxu1 }
 0x199   : > { %v2286_v12 = vmul.f32 -1.442695, %v969_v39  ;;  %v2287_v19 = vmul.f32 -1.442695, %v971_v14 }
 0x19a   : > { %2548 = vpow2.f32 %v2285_v9 }
 0x19b   : > { %2550 = vpow2.f32 %v2286_v12 }
 0x19c   : > { %2552 = vpow2.f32 %v2287_v19 }
 0x19d   : > { %2554 = vtanh.f32 %v970_v21 }
 0x1a4   : > { %v2549_v22 = vpop.eup %2548 }
 0x1a5   : > { %v2551_v23 = vpop.eup %2550  ;;  %v975_v25 = vadd.f32 1.0, %v2549_v22 }
 0x1a6   : > { %v981_v27 = vadd.f32 1.0, %v2551_v23  ;;  %v2553_v32 = vpop.eup %2552 }
 0x1a7   : > { %2556 = vrcp.f32 %v975_v25  ;;  %v2555_v34 = vpop.eup %2554  ;;  %v988_v39 = vadd.f32 1.0, %v2553_v32 }
 0x1a8   : > { %2558 = vrcp.f32 %v981_v27 }
 0x1a9   : > { %2560 = vrcp.f32 %v988_v39 }
 0x1b1   : > { %v2557_v18 = vpop.eup %2556 }
 0x1b2   : > { %v2559_v20 = vpop.eup %2558  ;;  %v992_v35 = vmul.f32 %v2557_v18, %v2555_v34 }
 0x1b3   : > { %v991_v36 = vmul.f32 0.0, %v2559_v20  ;;  %v2561_v17 = vpop.eup %2560 }
 0x1b5   : > { %v3331_v15 = vadd.f32 %v992_v35, %v991_v36 }
 0x1b7   : > { %2562 = vtanh.f32 %v3331_v15 }
 0x1c1   : > { %v2563_v33 = vpop.eup %2562 }
 0x1c2   : > { %v995_v7 = vmul.f32 %v2563_v33, %v2561_v17 }
 0x1c4   : > { %996 = vst [vmem:[#allocation2] sm:$0x3] %v995_v7  ;;  %v997_v8 = vpack.c.bf16 %v995_v7, %v995_v7 }
 0x1c6   : > { %1031 = vmatmul.mubr.bf16.vlgmr.msra.gmra.mrb[8].mxu0 %v997_v8  ;;  %1072 = vmatmul.mubr.bf16.vlgmr.msra.gmra.mrb[8].mxu1 %v997_v8 }
 0x1c7   : > { %1129 = vmatpush1.bf16.msra.mxu0 %v3149_v40  ;;  %1170 = vmatpush1.bf16.msra.mxu1 %v3152_v41 }
 0x1c8   : > { %1130 = vmatprep.subr.bf16.mxu0 %v3155_v42  ;;  %1171 = vmatprep.subr.bf16.mxu1 %v3160_v43 }
 0x1c9   : > { %1160 = vmatprep.mubr.bf16.mxu0 %v2863_v4  ;;  %1201 = vmatprep.mubr.bf16.mxu1 %v2863_v4 }
 0x1cb   : > { %1131 = vmatpush1.bf16.msra.mxu0 %v3163_v44  ;;  %1172 = vmatpush1.bf16.msra.mxu1 %v3168_v45 }
 0x1cc   : > { %1132 = vmatprep.subr.bf16.mxu0 %v3173_v46  ;;  %1173 = vmatprep.subr.bf16.mxu1 %v3176_v47 }
 0x1cf   : > { %1133 = vmatpush1.bf16.msra.mxu0 %v3181_v48  ;;  %1174 = vmatpush1.bf16.msra.mxu1 %v3186_v49 }
 0x1d0   : > { %1134 = vmatprep.subr.bf16.mxu0 %v3189_v50  ;;  %1175 = vmatprep.subr.bf16.mxu1 %v3194_v51 }
 0x1d3   : > { %1135 = vmatpush1.bf16.msra.mxu0 %v3199_v52  ;;  %1176 = vmatpush1.bf16.msra.mxu1 %v3202_v53 }
 0x1d4   : > { %1136 = vmatprep.subr.bf16.mxu0 %v3207_v54  ;;  %1177 = vmatprep.subr.bf16.mxu1 %v3210_v55 }
 0x1d7   : > { %1137 = vmatpush1.bf16.msra.mxu0 %v3215_v56  ;;  %1178 = vmatpush1.bf16.msra.mxu1 %v3218_v57 }
 0x1d8   : > { %1138 = vmatprep.subr.bf16.mxu0 %v3223_v58  ;;  %1179 = vmatprep.subr.bf16.mxu1 %v3226_v59 }
 0x1db   : > { %1139 = vmatpush1.bf16.msra.mxu0 %v3231_v60  ;;  %1180 = vmatpush1.bf16.msra.mxu1 %v3234_v61 }
 0x1dc   : > { %1140 = vmatprep.subr.bf16.mxu0 %v3239_v62  ;;  %1181 = vmatprep.subr.bf16.mxu1 %v3242_v63 }
 0x1df   : > { %1141 = vmatpush1.bf16.msra.mxu0 %v3247_v0  ;;  %1182 = vmatpush1.bf16.msra.mxu1 %v3250_v1 }
 0x1e0   : > { %1142 = vmatprep.subr.bf16.mxu0 %v3255_v2  ;;  %1183 = vmatprep.subr.bf16.mxu1 %v3258_v3 }
 0x1e3   : > { %1143 = vmatpush1.bf16.msra.mxu0 %v3263_v5  ;;  %1184 = vmatpush1.bf16.msra.mxu1 %v3266_v6 }
 0x1e4   : > { %1258 = vmatprep.subr.bf16.mxu0 %v3143_v37  ;;  %1299 = vmatprep.subr.bf16.mxu1 %v3146_v38 }
 0x299   : > { %v1032_v9 = vpop.f32.mrb[8].mxu0  ;;  %v1073_v10 = vpop.f32.mrb[8].mxu1 }
 0x29a   : > { %v1084_v11 = vrot.slane %v1032_v9, 6  ;;  %v1034_v12 = vpop.f32.mrb[9].mxu0  ;;  %v1075_v14 = vpop.f32.mrb[9].mxu1  ;;  %v1086_v39 = vrot.slane %v1073_v10, 6 }
 0x29b   : > { %v1085_v19 = vrot.slane %v1034_v12, 6  ;;  %v1036_v21 = vpop.f32.mrb[10].mxu0  ;;  %v1077_v22 = vpop.f32.mrb[10].mxu1  ;;  %v1087_v20 = vrot.slane %v1075_v14, 6  ;;  %v1116_v14 = vrot.slane %v3331_v15, 6 }
 0x29c   : > { %v1092_v23 = vadd.f32 %v1084_v11, %v3319_v30  ;;  %v1037_v25 = vpop.f32.mrb[11].mxu0  ;;  %v1078_v27 = vpop.f32.mrb[11].mxu1  ;;  %v1094_v17 = vadd.f32 %v1086_v39, %v3328_v16 }
 0x29d   : > { %v1093_v32 = vadd.f32 %v1085_v19, %v3321_v31  ;;  %v1095_v35 = vadd.f32 %v1087_v20, %v3325_v13 }
 0x29e   : > { %v2288_v34 = vmul.f32 -1.442695, %v1092_v23 }
 0x29f   : > { %v2289_v18 = vmul.f32 -1.442695, %v1093_v32  ;;  %v2290_v36 = vmul.f32 -1.442695, %v1095_v35 }
 0x2a0   : > { %2564 = vpow2.f32 %v2288_v34 }
 0x2a1   : > { %2566 = vpow2.f32 %v2289_v18 }
 0x2a2   : > { %2568 = vpow2.f32 %v2290_v36 }
 0x2a3   : > { %2570 = vtanh.f32 %v1094_v17 }
 0x2aa   : > { %v2565_v33 = vpop.eup %2564 }
 0x2ab   : > { %v2567_v7 = vpop.eup %2566  ;;  %v1099_v8 = vadd.f32 1.0, %v2565_v33 }
 0x2ac   : > { %v1105_v9 = vadd.f32 1.0, %v2567_v7  ;;  %v2569_v11 = vpop.eup %2568 }
 0x2ad   : > { %2572 = vrcp.f32 %v1099_v8  ;;  %v2571_v12 = vpop.eup %2570  ;;  %v1112_v23 = vadd.f32 1.0, %v2569_v11 }
 0x2ae   : > { %2574 = vrcp.f32 %v1105_v9 }
 0x2af   : > { %2576 = vrcp.f32 %v1112_v23 }
 0x2b7   : > { %v2573_v19 = vpop.eup %2572 }
 0x2b8   : > { %v2575_v21 = vpop.eup %2574  ;;  %v1119_v22 = vmul.f32 %v2573_v19, %v2571_v12 }
 0x2b9   : > { %v1118_v10 = vmul.f32 %v2575_v21, %v1116_v14  ;;  %v2577_v27 = vpop.eup %2576 }
 0x2bb   : > { %v3373_v25 = vadd.f32 %v1119_v22, %v1118_v10 }
 0x2bd   : > { %2578 = vtanh.f32 %v3373_v25 }
 0x2c7   : > { %v2579_v32 = vpop.eup %2578 }
 0x2c8   : > { %v1122_v34 = vmul.f32 %v2579_v32, %v2577_v27 }
 0x2ca   : > { %1123 = vst [vmem:[#allocation2] sm:$0xc] %v1122_v34  ;;  %v1124_v18 = vpack.c.bf16 %v1122_v34, %v1122_v34 }
 0x2cc   : > { %v1126_v20 = vrot.slane %v1124_v18, 1 }
 0x2ce   : > { %1161 = vmatmul.mubr.bf16.vlgmr.msra.gmra.mrb[12].mxu0 %v1126_v20  ;;  %1202 = vmatmul.mubr.bf16.vlgmr.msra.gmra.mrb[12].mxu1 %v1126_v20 }
 0x2cf   : > { %1259 = vmatpush1.bf16.msra.mxu0 %v3149_v40  ;;  %1300 = vmatpush1.bf16.msra.mxu1 %v3152_v41 }
 0x2d0   : > { %1260 = vmatprep.subr.bf16.mxu0 %v3155_v42  ;;  %1301 = vmatprep.subr.bf16.mxu1 %v3160_v43 }
 0x2d1   : > { %1290 = vmatprep.mubr.bf16.mxu0 %v2863_v4  ;;  %1331 = vmatprep.mubr.bf16.mxu1 %v2863_v4 }
 0x2d3   : > { %1261 = vmatpush1.bf16.msra.mxu0 %v3163_v44  ;;  %1302 = vmatpush1.bf16.msra.mxu1 %v3168_v45 }
 0x2d4   : > { %1262 = vmatprep.subr.bf16.mxu0 %v3173_v46  ;;  %1303 = vmatprep.subr.bf16.mxu1 %v3176_v47 }
 0x2d7   : > { %1263 = vmatpush1.bf16.msra.mxu0 %v3181_v48  ;;  %1304 = vmatpush1.bf16.msra.mxu1 %v3186_v49 }
 0x2d8   : > { %1264 = vmatprep.subr.bf16.mxu0 %v3189_v50  ;;  %1305 = vmatprep.subr.bf16.mxu1 %v3194_v51 }
 0x2db   : > { %1265 = vmatpush1.bf16.msra.mxu0 %v3199_v52  ;;  %1306 = vmatpush1.bf16.msra.mxu1 %v3202_v53 }
 0x2dc   : > { %1266 = vmatprep.subr.bf16.mxu0 %v3207_v54  ;;  %1307 = vmatprep.subr.bf16.mxu1 %v3210_v55 }
 0x2df   : > { %1267 = vmatpush1.bf16.msra.mxu0 %v3215_v56  ;;  %1308 = vmatpush1.bf16.msra.mxu1 %v3218_v57 }
 0x2e0   : > { %1268 = vmatprep.subr.bf16.mxu0 %v3223_v58  ;;  %1309 = vmatprep.subr.bf16.mxu1 %v3226_v59 }
 0x2e3   : > { %1269 = vmatpush1.bf16.msra.mxu0 %v3231_v60  ;;  %1310 = vmatpush1.bf16.msra.mxu1 %v3234_v61 }
 0x2e4   : > { %1270 = vmatprep.subr.bf16.mxu0 %v3239_v62  ;;  %1311 = vmatprep.subr.bf16.mxu1 %v3242_v63 }
 0x2e7   : > { %1271 = vmatpush1.bf16.msra.mxu0 %v3247_v0  ;;  %1312 = vmatpush1.bf16.msra.mxu1 %v3250_v1 }
 0x2e8   : > { %1272 = vmatprep.subr.bf16.mxu0 %v3255_v2  ;;  %1313 = vmatprep.subr.bf16.mxu1 %v3258_v3 }
 0x2eb   : > { %1273 = vmatpush1.bf16.msra.mxu0 %v3263_v5  ;;  %1314 = vmatpush1.bf16.msra.mxu1 %v3266_v6 }
 0x2ec   : > { %1388 = vmatprep.subr.bf16.mxu0 %v3143_v37  ;;  %1429 = vmatprep.subr.bf16.mxu1 %v3146_v38 }
 0x3a1   : > { %v1162_v15 = vpop.f32.mrb[12].mxu0  ;;  %v1203_v35 = vpop.f32.mrb[12].mxu1 }
 0x3a2   : > { %v1214_v39 = vrot.slane %v1162_v15, 4  ;;  %v1164_v36 = vpop.f32.mrb[13].mxu0  ;;  %v1205_v17 = vpop.f32.mrb[13].mxu1  ;;  %v1216_v10 = vrot.slane %v1203_v35, 4 }
 0x3a3   : > { %v1215_v33 = vrot.slane %v1164_v36, 4  ;;  %v1166_v7 = vpop.f32.mrb[14].mxu0  ;;  %v1207_v8 = vpop.f32.mrb[14].mxu1  ;;  %v1217_v22 = vrot.slane %v1205_v17, 4  ;;  %v1246_v17 = vrot.slane %v3373_v25, 6 }
 0x3a4   : > { %v1222_v9 = vadd.f32 %v1214_v39, %v3319_v30  ;;  %v1167_v11 = vpop.f32.mrb[15].mxu0  ;;  %v1208_v12 = vpop.f32.mrb[15].mxu1  ;;  %v1224_v32 = vadd.f32 %v1216_v10, %v3328_v16 }
 0x3a5   : > { %v1223_v19 = vadd.f32 %v1215_v33, %v3321_v31  ;;  %v1225_v23 = vadd.f32 %v1217_v22, %v3325_v13 }
 0x3a6   : > { %v2291_v14 = vmul.f32 -1.442695, %v1222_v9 }
 0x3a7   : > { %v2292_v21 = vmul.f32 -1.442695, %v1223_v19  ;;  %v2293_v27 = vmul.f32 -1.442695, %v1225_v23 }
 0x3a8   : > { %2580 = vpow2.f32 %v2291_v14 }
 0x3a9   : > { %2582 = vpow2.f32 %v2292_v21 }
 0x3aa   : > { %2584 = vpow2.f32 %v2293_v27 }
 0x3ab   : > { %2586 = vtanh.f32 %v1224_v32 }
 0x3b2   : > { %v2581_v34 = vpop.eup %2580 }
 0x3b3   : > { %v2583_v18 = vpop.eup %2582  ;;  %v1229_v20 = vadd.f32 1.0, %v2581_v34 }
 0x3b4   : > { %v1235_v15 = vadd.f32 1.0, %v2583_v18  ;;  %v2585_v39 = vpop.eup %2584 }
 0x3b5   : > { %2588 = vrcp.f32 %v1229_v20  ;;  %v2587_v36 = vpop.eup %2586  ;;  %v1242_v9 = vadd.f32 1.0, %v2585_v39 }
 0x3b6   : > { %2590 = vrcp.f32 %v1235_v15 }
 0x3b7   : > { %2592 = vrcp.f32 %v1242_v9 }
 0x3bf   : > { %v2589_v33 = vpop.eup %2588 }
 0x3c0   : > { %v2591_v7 = vpop.eup %2590  ;;  %v1249_v8 = vmul.f32 %v2589_v33, %v2587_v36 }
 0x3c1   : > { %v1248_v35 = vmul.f32 %v2591_v7, %v1246_v17  ;;  %v2593_v12 = vpop.eup %2592 }
 0x3c3   : > { %v3415_v11 = vadd.f32 %v1249_v8, %v1248_v35 }
 0x3c5   : > { %2594 = vtanh.f32 %v3415_v11 }
 0x3cf   : > { %v2595_v19 = vpop.eup %2594 }
 0x3d0   : > { %v1252_v14 = vmul.f32 %v2595_v19, %v2593_v12 }
 0x3d2   : > { %1253 = vst [vmem:[#allocation2] sm:$0x30] %v1252_v14  ;;  %v1254_v21 = vpack.c.bf16 %v1252_v14, %v1252_v14 }
 0x3d4   : > { %v1256_v22 = vrot.slane %v1254_v21, 2 }
 0x3d6   : > { %1291 = vmatmul.mubr.bf16.vlgmr.msra.gmra.mrb[16].mxu0 %v1256_v22  ;;  %1332 = vmatmul.mubr.bf16.vlgmr.msra.gmra.mrb[16].mxu1 %v1256_v22 }
 0x3d7   : > { %1389 = vmatpush1.bf16.msra.mxu0 %v3149_v40  ;;  %1430 = vmatpush1.bf16.msra.mxu1 %v3152_v41 }
 0x3d8   : > { %1390 = vmatprep.subr.bf16.mxu0 %v3155_v42  ;;  %1431 = vmatprep.subr.bf16.mxu1 %v3160_v43 }
 0x3d9   : > { %1420 = vmatprep.mubr.bf16.mxu0 %v2863_v4  ;;  %1461 = vmatprep.mubr.bf16.mxu1 %v2863_v4 }
 0x3db   : > { %1391 = vmatpush1.bf16.msra.mxu0 %v3163_v44  ;;  %1432 = vmatpush1.bf16.msra.mxu1 %v3168_v45 }
 0x3dc   : > { %1392 = vmatprep.subr.bf16.mxu0 %v3173_v46  ;;  %1433 = vmatprep.subr.bf16.mxu1 %v3176_v47 }
 0x3df   : > { %1393 = vmatpush1.bf16.msra.mxu0 %v3181_v48  ;;  %1434 = vmatpush1.bf16.msra.mxu1 %v3186_v49 }
 0x3e0   : > { %1394 = vmatprep.subr.bf16.mxu0 %v3189_v50  ;;  %1435 = vmatprep.subr.bf16.mxu1 %v3194_v51 }
 0x3e3   : > { %1395 = vmatpush1.bf16.msra.mxu0 %v3199_v52  ;;  %1436 = vmatpush1.bf16.msra.mxu1 %v3202_v53 }
 0x3e4   : > { %1396 = vmatprep.subr.bf16.mxu0 %v3207_v54  ;;  %1437 = vmatprep.subr.bf16.mxu1 %v3210_v55 }
 0x3e7   : > { %1397 = vmatpush1.bf16.msra.mxu0 %v3215_v56  ;;  %1438 = vmatpush1.bf16.msra.mxu1 %v3218_v57 }
 0x3e8   : > { %1398 = vmatprep.subr.bf16.mxu0 %v3223_v58  ;;  %1439 = vmatprep.subr.bf16.mxu1 %v3226_v59 }
 0x3eb   : > { %1399 = vmatpush1.bf16.msra.mxu0 %v3231_v60  ;;  %1440 = vmatpush1.bf16.msra.mxu1 %v3234_v61 }
 0x3ec   : > { %1400 = vmatprep.subr.bf16.mxu0 %v3239_v62  ;;  %1441 = vmatprep.subr.bf16.mxu1 %v3242_v63 }
 0x3ef   : > { %1401 = vmatpush1.bf16.msra.mxu0 %v3247_v0  ;;  %1442 = vmatpush1.bf16.msra.mxu1 %v3250_v1 }
 0x3f0   : > { %1402 = vmatprep.subr.bf16.mxu0 %v3255_v2  ;;  %1443 = vmatprep.subr.bf16.mxu1 %v3258_v3 }
 0x3f3   : > { %1403 = vmatpush1.bf16.msra.mxu0 %v3263_v5  ;;  %1444 = vmatpush1.bf16.msra.mxu1 %v3266_v6 }
 0x3f4   : > { %1503 = vmatprep.subr.bf16.mxu0 %v3143_v37  ;;  %1544 = vmatprep.subr.bf16.mxu1 %v3146_v38 }
 0x4a9   : > { %v1292_v25 = vpop.f32.mrb[16].mxu0  ;;  %v1333_v23 = vpop.f32.mrb[16].mxu1 }
 0x4aa   : > { %v1344_v10 = vrot.slane %v1292_v25, 2  ;;  %v1294_v27 = vpop.f32.mrb[17].mxu0  ;;  %v1335_v32 = vpop.f32.mrb[17].mxu1  ;;  %v1346_v35 = vrot.slane %v1333_v23, 2 }
 0x4ab   : > { %v1345_v34 = vrot.slane %v1294_v27, 2  ;;  %v1296_v18 = vpop.f32.mrb[18].mxu0  ;;  %v1337_v20 = vpop.f32.mrb[18].mxu1  ;;  %v1347_v8 = vrot.slane %v1335_v32, 2  ;;  %v1376_v27 = vrot.slane %v3415_v11, 6 }
 0x4ac   : > { %v1352_v15 = vadd.f32 %v1344_v10, %v3319_v30  ;;  %v1297_v39 = vpop.f32.mrb[19].mxu0  ;;  %v1338_v36 = vpop.f32.mrb[19].mxu1  ;;  %v1354_v19 = vadd.f32 %v1346_v35, %v3328_v16 }
 0x4ad   : > { %v1353_v33 = vadd.f32 %v1345_v34, %v3321_v31  ;;  %v1355_v9 = vadd.f32 %v1347_v8, %v3325_v13 }
 0x4ae   : > { %v2294_v17 = vmul.f32 -1.442695, %v1352_v15 }
 0x4af   : > { %v2295_v7 = vmul.f32 -1.442695, %v1353_v33  ;;  %v2296_v12 = vmul.f32 -1.442695, %v1355_v9 }
 0x4b0   : > { %2596 = vpow2.f32 %v2294_v17 }
 0x4b1   : > { %2598 = vpow2.f32 %v2295_v7 }
 0x4b2   : > { %2600 = vpow2.f32 %v2296_v12 }
 0x4b3   : > { %2602 = vtanh.f32 %v1354_v19 }
 0x4ba   : > { %v2597_v14 = vpop.eup %2596 }
 0x4bb   : > { %v2599_v21 = vpop.eup %2598  ;;  %v1359_v22 = vadd.f32 1.0, %v2597_v14 }
 0x4bc   : > { %v1365_v30 = vadd.f32 1.0, %v2599_v21  ;;  %v2601_v31 = vpop.eup %2600 }
 0x4bd   : > { %2604 = vrcp.f32 %v1359_v22  ;;  %v2603_v25 = vpop.eup %2602  ;;  %v1372_v13 = vadd.f32 1.0, %v2601_v31 }
 0x4be   : > { %2606 = vrcp.f32 %v1365_v30 }
 0x4bf   : > { %2608 = vrcp.f32 %v1372_v13 }
 0x4c7   : > { %v2605_v10 = vpop.eup %2604 }
 0x4c8   : > { %v2607_v32 = vpop.eup %2606  ;;  %v1379_v34 = vmul.f32 %v2605_v10, %v2603_v25 }
 0x4c9   : > { %v1378_v23 = vmul.f32 %v2607_v32, %v1376_v27  ;;  %v2609_v16 = vpop.eup %2608 }
 0x4cb   : > { %v3457_v18 = vadd.f32 %v1379_v34, %v1378_v23 }
 0x4cd   : > { %2610 = vtanh.f32 %v3457_v18  ;;  %v1494_v32 = vrot.slane %v3457_v18, 6  ;;  %v3507_v18 = vld [vmem:[%s3083_s1 + $0x8] ss:$16 sps:$4 sm:$0xff]  }
 0x4d7   : > { %v2611_v20 = vpop.eup %2610 }
 0x4d8   : > { %v1382_v15 = vmul.f32 %v2611_v20, %v2609_v16 }
 0x4da   : > { %1383 = vst [vmem:[#allocation2] sm:$0xc0] %v1382_v15  ;;  %v1384_v39 = vpack.c.bf16 %v1382_v15, %v1382_v15 }
 0x4dc   : > { %v1386_v36 = vrot.slane %v1384_v39, 3 }
 0x4de   : > { %1421 = vmatmul.mubr.bf16.vlgmr.msra.gmra.mrb[20].mxu0 %v1386_v36  ;;  %1462 = vmatmul.mubr.bf16.vlgmr.msra.gmra.mrb[20].mxu1 %v1386_v36 }
 0x4df   : > { %1504 = vmatpush1.bf16.msra.mxu0 %v3149_v40  ;;  %1545 = vmatpush1.bf16.msra.mxu1 %v3152_v41 }
 0x4e0   : > { %1505 = vmatprep.subr.bf16.mxu0 %v3155_v42  ;;  %1546 = vmatprep.subr.bf16.mxu1 %v3160_v43 }
 0x4e1   : > { %1535 = vmatprep.mubr.bf16.mxu0 %v2863_v4  ;;  %1576 = vmatprep.mubr.bf16.mxu1 %v2863_v4 }
 0x4e3   : > { %1506 = vmatpush1.bf16.msra.mxu0 %v3163_v44  ;;  %1547 = vmatpush1.bf16.msra.mxu1 %v3168_v45 }
 0x4e4   : > { %1507 = vmatprep.subr.bf16.mxu0 %v3173_v46  ;;  %1548 = vmatprep.subr.bf16.mxu1 %v3176_v47 }
 0x4e7   : > { %1508 = vmatpush1.bf16.msra.mxu0 %v3181_v48  ;;  %1549 = vmatpush1.bf16.msra.mxu1 %v3186_v49 }
 0x4e8   : > { %1509 = vmatprep.subr.bf16.mxu0 %v3189_v50  ;;  %1550 = vmatprep.subr.bf16.mxu1 %v3194_v51 }
 0x4eb   : > { %1510 = vmatpush1.bf16.msra.mxu0 %v3199_v52  ;;  %1551 = vmatpush1.bf16.msra.mxu1 %v3202_v53 }
 0x4ec   : > { %1511 = vmatprep.subr.bf16.mxu0 %v3207_v54  ;;  %1552 = vmatprep.subr.bf16.mxu1 %v3210_v55 }
 0x4ef   : > { %1512 = vmatpush1.bf16.msra.mxu0 %v3215_v56  ;;  %1553 = vmatpush1.bf16.msra.mxu1 %v3218_v57 }
 0x4f0   : > { %1513 = vmatprep.subr.bf16.mxu0 %v3223_v58  ;;  %1554 = vmatprep.subr.bf16.mxu1 %v3226_v59 }
 0x4f3   : > { %1514 = vmatpush1.bf16.msra.mxu0 %v3231_v60  ;;  %1555 = vmatpush1.bf16.msra.mxu1 %v3234_v61 }
 0x4f4   : > { %1515 = vmatprep.subr.bf16.mxu0 %v3239_v62  ;;  %1556 = vmatprep.subr.bf16.mxu1 %v3242_v63 }
 0x4f7   : > { %1516 = vmatpush1.bf16.msra.mxu0 %v3247_v0  ;;  %1557 = vmatpush1.bf16.msra.mxu1 %v3250_v1 }
 0x4f8   : > { %1517 = vmatprep.subr.bf16.mxu0 %v3255_v2  ;;  %1558 = vmatprep.subr.bf16.mxu1 %v3258_v3 }
 0x4fb   : > { %1518 = vmatpush1.bf16.msra.mxu0 %v3263_v5  ;;  %1559 = vmatpush1.bf16.msra.mxu1 %v3266_v6 }
 0x4fc   : > { %1633 = vmatprep.subr.bf16.mxu0 %v3143_v37  ;;  %1674 = vmatprep.subr.bf16.mxu1 %v3146_v38 }
 0x5b1   : > { %v1422_v40 = vpop.f32.mrb[20].mxu0  ;;  %v1463_v41 = vpop.f32.mrb[20].mxu1 }
 0x5b2   : > { %v1470_v42 = vadd.f32 %v1422_v40, %v3311_v24  ;;  %v1424_v11 = vpop.f32.mrb[21].mxu0  ;;  %v1465_v33 = vpop.f32.mrb[21].mxu1  ;;  %v1472_v38 = vadd.f32 %v1463_v41, %v3313_v26  ;;  %v3503_v41 = vld [vmem:[%s3083_s1] ss:$16 sps:$4 sm:$0xff]  }
 0x5b3   : > { %v1471_v17 = vadd.f32 %v1424_v11, %v3315_v28  ;;  %v1426_v7 = vpop.f32.mrb[22].mxu0  ;;  %v1467_v8 = vpop.f32.mrb[22].mxu1  ;;  %v1473_v37 = vadd.f32 %v1465_v33, %v3317_v29 }
 0x5b4   : > { %v2297_v9 = vmul.f32 -1.442695, %v1470_v42  ;;  %v1427_v35 = vpop.f32.mrb[23].mxu0  ;;  %v1468_v12 = vpop.f32.mrb[23].mxu1  ;;  %v3511_v42 = vld [vmem:[%s3083_s1 + $0x24] ss:$16 sps:$4 sm:$0xff]  }
 0x5b5   : > { %v2298_v19 = vmul.f32 -1.442695, %v1471_v17  ;;  %v2299_v14 = vmul.f32 -1.442695, %v1473_v37 }
 0x5b6   : > { %2612 = vpow2.f32 %v2297_v9 }
 0x5b7   : > { %2614 = vpow2.f32 %v2298_v19 }
 0x5b8   : > { %2616 = vpow2.f32 %v2299_v14 }
 0x5b9   : > { %2618 = vtanh.f32 %v1472_v38 }
 0x5c0   : > { %v2613_v21 = vpop.eup %2612 }
 0x5c1   : > { %v2615_v22 = vpop.eup %2614  ;;  %v1477_v30 = vadd.f32 1.0, %v2613_v21  ;;  %v2681_v21 = vld [vmem:[%s3083_s1 + $0x2c] ss:$16 sps:$4 sm:$0xff]  }
 0x5c2   : > { %v1483_v31 = vadd.f32 1.0, %v2615_v22  ;;  %v2617_v25 = vpop.eup %2616  ;;  %v2682_v22 = vld [vmem:[%s3083_s1 + $0x20] ss:$16 sps:$4 sm:$0xff]  }
 0x5c3   : > { %2620 = vrcp.f32 %v1477_v30  ;;  %v2619_v10 = vpop.eup %2618  ;;  %v1490_v23 = vadd.f32 1.0, %v2617_v25  ;;  %v2683_v30 = vld [vmem:[%s3083_s1 + $0x28] ss:$16 sps:$4 sm:$0xff]   ;;  %v2685_v25 = vld [vmem:[%s3083_s1 + $0x4c] ss:$16 sps:$4 sm:$0xff]  }
 0x5c4   : > { %2622 = vrcp.f32 %v1483_v31  ;;  %v2684_v31 = vld [vmem:[%s3083_s1 + $0x44] ss:$16 sps:$4 sm:$0xff]  }
 0x5c5   : > { %2624 = vrcp.f32 %v1490_v23  ;;  %v2692_v23 = vld [vmem:[%s3083_s1 + $0x84] ss:$16 sps:$4 sm:$0xff]  }
 0x5cd   : > { %v2621_v27 = vpop.eup %2620 }
 0x5ce   : > { %v2623_v34 = vpop.eup %2622  ;;  %v1497_v13 = vmul.f32 %v2621_v27, %v2619_v10  ;;  %v2686_v10 = vld [vmem:[%s3083_s1 + $0x40] ss:$16 sps:$4 sm:$0xff]   ;;  %v2687_v27 = vld [vmem:[%s3083_s1 + $0x48] ss:$16 sps:$4 sm:$0xff]  }
 0x5cf   : > { %v1496_v16 = vmul.f32 %v2623_v34, %v1494_v32  ;;  %v2625_v15 = vpop.eup %2624  ;;  %v2688_v32 = vld [vmem:[%s3083_s1 + $0x64] ss:$16 sps:$4 sm:$0xff]   ;;  %v2690_v34 = vld [vmem:[%s3083_s1 + $0x60] ss:$16 sps:$4 sm:$0xff]  }
 0x5d1   : > { %v3499_v20 = vadd.f32 %v1497_v13, %v1496_v16  ;;  %v2691_v13 = vld [vmem:[%s3083_s1 + $0x68] ss:$16 sps:$4 sm:$0xff]   ;;  %v2693_v16 = vld [vmem:[%s3083_s1 + $0x8c] ss:$16 sps:$4 sm:$0xff]  }
 0x5d3   : > { %2626 = vtanh.f32 %v3499_v20  ;;  %v1621_v33 = vrot.slane %v3499_v20, 6  ;;  %v2694_v20 = vld [vmem:[%s3083_s1 + $0x80] ss:$16 sps:$4 sm:$0xff]  }
 0x5dd   : > { %v2627_v39 = vpop.eup %2626 }
 0x5de   : > { %v1500_v36 = vmul.f32 %v2627_v39, %v2625_v15  ;;  %v2695_v15 = vld [vmem:[%s3083_s1 + $0x88] ss:$16 sps:$4 sm:$0xff]   ;;  %v2696_v39 = vld [vmem:[%s3083_s1 + $0xa4] ss:$16 sps:$4 sm:$0xff]  }
 0x5e0   : > { %1501 = vst [vmem:[#allocation2 + $0x8] sm:$0x3] %v1500_v36  ;;  %v1502_v40 = vpack.c.bf16 %v1500_v36, %v1500_v36  ;;  %v2697_v36 = vld [vmem:[%s3083_s1 + $0xac] ss:$16 sps:$4 sm:$0xff]  }
 0x5e2   : > { %1536 = vmatmul.mubr.bf16.vlgmr.msra.gmra.mrb[24].mxu0 %v1502_v40  ;;  %1577 = vmatmul.mubr.bf16.vlgmr.msra.gmra.mrb[24].mxu1 %v1502_v40  ;;  %v2698_v40 = vld [vmem:[%s3083_s1 + $0xa0] ss:$16 sps:$4 sm:$0xff]  }
 0x5e3   : > { %1634 = vmatpush1.bf16.msra.mxu0 %v3503_v41  ;;  %1675 = vmatpush1.bf16.msra.mxu1 %v3507_v18 }
 0x5e4   : > { %1635 = vmatprep.subr.bf16.mxu0 %v3511_v42  ;;  %1676 = vmatprep.subr.bf16.mxu1 %v3160_v43  ;;  %v2679_v43 = vld [vmem:[%s3083_s1 + $0x4] ss:$16 sps:$4 sm:$0xff]  }
 0x5e5   : > { %1665 = vmatprep.mubr.bf16.mxu0 %v2863_v4  ;;  %1706 = vmatprep.mubr.bf16.mxu1 %v2863_v4 }
 0x5e7   : > { %1636 = vmatpush1.bf16.msra.mxu0 %v3163_v44  ;;  %1677 = vmatpush1.bf16.msra.mxu1 %v3168_v45  ;;  %v2680_v44 = vld [vmem:[%s3083_s1 + $0xc] ss:$16 sps:$4 sm:$0xff]  }
 0x5e8   : > { %1637 = vmatprep.subr.bf16.mxu0 %v3173_v46  ;;  %1678 = vmatprep.subr.bf16.mxu1 %v3176_v47 }
 0x5eb   : > { %1638 = vmatpush1.bf16.msra.mxu0 %v3181_v48  ;;  %1679 = vmatpush1.bf16.msra.mxu1 %v3186_v49 }
 0x5ec   : > { %1639 = vmatprep.subr.bf16.mxu0 %v3189_v50  ;;  %1680 = vmatprep.subr.bf16.mxu1 %v3194_v51 }
 0x5ef   : > { %1640 = vmatpush1.bf16.msra.mxu0 %v3199_v52  ;;  %1681 = vmatpush1.bf16.msra.mxu1 %v3202_v53 }
 0x5f0   : > { %1641 = vmatprep.subr.bf16.mxu0 %v3207_v54  ;;  %1682 = vmatprep.subr.bf16.mxu1 %v3210_v55 }
 0x5f3   : > { %1642 = vmatpush1.bf16.msra.mxu0 %v3215_v56  ;;  %1683 = vmatpush1.bf16.msra.mxu1 %v3218_v57 }
 0x5f4   : > { %1643 = vmatprep.subr.bf16.mxu0 %v3223_v58  ;;  %1684 = vmatprep.subr.bf16.mxu1 %v3226_v59 }
 0x5f7   : > { %1644 = vmatpush1.bf16.msra.mxu0 %v3231_v60  ;;  %1685 = vmatpush1.bf16.msra.mxu1 %v3234_v61 }
 0x5f8   : > { %1645 = vmatprep.subr.bf16.mxu0 %v3239_v62  ;;  %1686 = vmatprep.subr.bf16.mxu1 %v3242_v63 }
 0x5fb   : > { %1646 = vmatpush1.bf16.msra.mxu0 %v3247_v0  ;;  %1687 = vmatpush1.bf16.msra.mxu1 %v3250_v1 }
 0x5fc   : > { %1647 = vmatprep.subr.bf16.mxu0 %v3255_v2  ;;  %1688 = vmatprep.subr.bf16.mxu1 %v3258_v3 }
 0x5ff   : > { %1648 = vmatpush1.bf16.msra.mxu0 %v3263_v5  ;;  %1689 = vmatpush1.bf16.msra.mxu1 %v3266_v6 }
 0x600   : > { %1763 = vmatprep.subr.bf16.mxu0 %v2679_v43  ;;  %1804 = vmatprep.subr.bf16.mxu1 %v2680_v44  ;;  %v2702_v43 = vld [vmem:[%s3083_s1 + $0xc0] ss:$16 sps:$4 sm:$0xff]   ;;  %v2703_v44 = vld [vmem:[%s3083_s1 + $0xc8] ss:$16 sps:$4 sm:$0xff]  }
 0x6b5   : > { %v1537_v45 = vpop.f32.mrb[24].mxu0  ;;  %v1578_v46 = vpop.f32.mrb[24].mxu1 }
 0x6b6   : > { %v1589_v47 = vrot.slane %v1537_v45, 6  ;;  %v1539_v48 = vpop.f32.mrb[25].mxu0  ;;  %v1580_v49 = vpop.f32.mrb[25].mxu1  ;;  %v1591_v61 = vrot.slane %v1578_v46, 6  ;;  %v2704_v45 = vld [vmem:[%s3083_s1 + $0xe4] ss:$16 sps:$4 sm:$0xff]  }
 0x6b7   : > { %v1590_v50 = vrot.slane %v1539_v48, 6  ;;  %v1541_v51 = vpop.f32.mrb[26].mxu0  ;;  %v1582_v52 = vpop.f32.mrb[26].mxu1  ;;  %v1592_v59 = vrot.slane %v1580_v49, 6  ;;  %v2705_v46 = vld [vmem:[%s3083_s1 + $0xec] ss:$16 sps:$4 sm:$0xff]  }
 0x6b8   : > { %v1597_v53 = vadd.f32 %v1589_v47, %v3311_v24  ;;  %v1542_v54 = vpop.f32.mrb[27].mxu0  ;;  %v1583_v55 = vpop.f32.mrb[27].mxu1  ;;  %v1599_v63 = vadd.f32 %v1591_v61, %v3313_v26  ;;  %v2706_v47 = vld [vmem:[%s3083_s1 + $0xe0] ss:$16 sps:$4 sm:$0xff]   ;;  %v2707_v48 = vld [vmem:[%s3083_s1 + $0xe8] ss:$16 sps:$4 sm:$0xff]  }
 0x6b9   : > { %v1598_v56 = vadd.f32 %v1590_v50, %v3315_v28  ;;  %v1600_v60 = vadd.f32 %v1592_v59, %v3317_v29 }
 0x6ba   : > { %v2300_v57 = vmul.f32 -1.442695, %v1597_v53 }
 0x6bb   : > { %v2301_v58 = vmul.f32 -1.442695, %v1598_v56  ;;  %v2302_v62 = vmul.f32 -1.442695, %v1600_v60 }
 0x6bc   : > { %2628 = vpow2.f32 %v2300_v57 }
 0x6bd   : > { %2630 = vpow2.f32 %v2301_v58 }
 0x6be   : > { %2632 = vpow2.f32 %v2302_v62 }
 0x6bf   : > { %2634 = vtanh.f32 %v1599_v63 }
 0x6c6   : > { %v2629_v0 = vpop.eup %2628 }
 0x6c7   : > { %v2631_v1 = vpop.eup %2630  ;;  %v1604_v2 = vadd.f32 1.0, %v2629_v0 }
 0x6c8   : > { %v1610_v3 = vadd.f32 1.0, %v2631_v1  ;;  %v2633_v5 = vpop.eup %2632 }
 0x6c9   : > { %2636 = vrcp.f32 %v1604_v2  ;;  %v2635_v6 = vpop.eup %2634  ;;  %v1617_v8 = vadd.f32 1.0, %v2633_v5 }
 0x6ca   : > { %2638 = vrcp.f32 %v1610_v3 }
 0x6cb   : > { %2640 = vrcp.f32 %v1617_v8 }
 0x6d3   : > { %v2637_v11 = vpop.eup %2636 }
 0x6d4   : > { %v2639_v17 = vpop.eup %2638  ;;  %v1624_v7 = vmul.f32 %v2637_v11, %v2635_v6 }
 0x6d5   : > { %v1623_v9 = vmul.f32 %v2639_v17, %v1621_v33  ;;  %v2641_v12 = vpop.eup %2640 }
 0x6d7   : > { %v3550_v35 = vadd.f32 %v1624_v7, %v1623_v9 }
 0x6d9   : > { %2642 = vtanh.f32 %v3550_v35  ;;  %v1751_v9 = vrot.slane %v3550_v35, 6 }
 0x6e3   : > { %v2643_v19 = vpop.eup %2642 }
 0x6e4   : > { %v1627_v37 = vmul.f32 %v2643_v19, %v2641_v12 }
 0x6e6   : > { %1628 = vst [vmem:[#allocation2 + $0x8] sm:$0xc] %v1627_v37  ;;  %v1629_v14 = vpack.c.bf16 %v1627_v37, %v1627_v37 }
 0x6e8   : > { %v1631_v38 = vrot.slane %v1629_v14, 1 }
 0x6ea   : > { %1666 = vmatmul.mubr.bf16.vlgmr.msra.gmra.mrb[28].mxu0 %v1631_v38  ;;  %1707 = vmatmul.mubr.bf16.vlgmr.msra.gmra.mrb[28].mxu1 %v1631_v38 }
 0x6eb   : > { %1764 = vmatpush1.bf16.msra.mxu0 %v3503_v41  ;;  %1805 = vmatpush1.bf16.msra.mxu1 %v3507_v18  ;;  %v2699_v41 = vld [vmem:[%s3083_s1 + $0xa8] ss:$16 sps:$4 sm:$0xff]   ;;  %v2700_v18 = vld [vmem:[%s3083_s1 + $0xc4] ss:$16 sps:$4 sm:$0xff]  }
 0x6ec   : > { %1765 = vmatprep.subr.bf16.mxu0 %v3511_v42  ;;  %1806 = vmatprep.subr.bf16.mxu1 %v2681_v21  ;;  %v2701_v42 = vld [vmem:[%s3083_s1 + $0xcc] ss:$16 sps:$4 sm:$0xff]  }
 0x6ed   : > { %1795 = vmatprep.mubr.bf16.mxu0 %v2863_v4  ;;  %1836 = vmatprep.mubr.bf16.mxu1 %v2863_v4  ;;  %v2689_v4 = vld [vmem:[%s3083_s1 + $0x6c] ss:$16 sps:$4 sm:$0xff]  }
 0x6ef   : > { %1766 = vmatpush1.bf16.msra.mxu0 %v2682_v22  ;;  %1807 = vmatpush1.bf16.msra.mxu1 %v2683_v30 }
 0x6f0   : > { %1767 = vmatprep.subr.bf16.mxu0 %v2684_v31  ;;  %1808 = vmatprep.subr.bf16.mxu1 %v2685_v25 }
 0x6f3   : > { %1768 = vmatpush1.bf16.msra.mxu0 %v2686_v10  ;;  %1809 = vmatpush1.bf16.msra.mxu1 %v2687_v27 }
 0x6f4   : > { %1769 = vmatprep.subr.bf16.mxu0 %v2688_v32  ;;  %1810 = vmatprep.subr.bf16.mxu1 %v2689_v4 }
 0x6f7   : > { %1770 = vmatpush1.bf16.msra.mxu0 %v2690_v34  ;;  %1811 = vmatpush1.bf16.msra.mxu1 %v2691_v13 }
 0x6f8   : > { %1771 = vmatprep.subr.bf16.mxu0 %v2692_v23  ;;  %1812 = vmatprep.subr.bf16.mxu1 %v2693_v16 }
 0x6fb   : > { %1772 = vmatpush1.bf16.msra.mxu0 %v2694_v20  ;;  %1813 = vmatpush1.bf16.msra.mxu1 %v2695_v15 }
 0x6fc   : > { %1773 = vmatprep.subr.bf16.mxu0 %v2696_v39  ;;  %1814 = vmatprep.subr.bf16.mxu1 %v2697_v36 }
 0x6ff   : > { %1774 = vmatpush1.bf16.msra.mxu0 %v2698_v40  ;;  %1815 = vmatpush1.bf16.msra.mxu1 %v2699_v41 }
 0x700   : > { %1775 = vmatprep.subr.bf16.mxu0 %v2700_v18  ;;  %1816 = vmatprep.subr.bf16.mxu1 %v2701_v42 }
 0x703   : > { %1776 = vmatpush1.bf16.msra.mxu0 %v2702_v43  ;;  %1817 = vmatpush1.bf16.msra.mxu1 %v2703_v44 }
 0x704   : > { %1777 = vmatprep.subr.bf16.mxu0 %v2704_v45  ;;  %1818 = vmatprep.subr.bf16.mxu1 %v2705_v46 }
 0x707   : > { %1778 = vmatpush1.bf16.msra.mxu0 %v2706_v47  ;;  %1819 = vmatpush1.bf16.msra.mxu1 %v2707_v48 }
 0x7bd   : > { %v1667_v49 = vpop.f32.mrb[28].mxu0  ;;  %v1708_v50 = vpop.f32.mrb[28].mxu1 }
 0x7be   : > { %v1719_v51 = vrot.slane %v1667_v49, 4  ;;  %v1669_v52 = vpop.f32.mrb[29].mxu0  ;;  %v1710_v53 = vpop.f32.mrb[29].mxu1  ;;  %v1721_v1 = vrot.slane %v1708_v50, 4 }
 0x7bf   : > { %v1720_v54 = vrot.slane %v1669_v52, 4  ;;  %v1671_v55 = vpop.f32.mrb[30].mxu0  ;;  %v1712_v56 = vpop.f32.mrb[30].mxu1  ;;  %v1722_v63 = vrot.slane %v1710_v53, 4 }
 0x7c0   : > { %v1727_v57 = vadd.f32 %v1719_v51, %v3311_v24  ;;  %v1672_v58 = vpop.f32.mrb[31].mxu0  ;;  %v1713_v59 = vpop.f32.mrb[31].mxu1  ;;  %v1729_v3 = vadd.f32 %v1721_v1, %v3313_v26  ;;  %v2718_v1 = vld [vmem:[#allocation7 + $0x10] sm:$0xff] (!%p2309_p10)  }
 0x7c1   : > { %v1728_v60 = vadd.f32 %v1720_v54, %v3315_v28  ;;  %v1730_v0 = vadd.f32 %v1722_v63, %v3317_v29  ;;  %v2864_v58 = vmov (!%p2309_p10), 0.0   ;;  %v2709_v59 = vld [vmem:[%s3645_s4 + $0x8] sm:$0xff] (!%p2309_p10)   ;;  %v2717_v63 = vld [vmem:[#allocation7 + $0x8] sm:$0xff] (!%p2309_p10)  }
 0x7c2   : > { %v2303_v61 = vmul.f32 -1.442695, %v1727_v57  ;;  %v2708_v57 = vld [vmem:[%s3645_s4] sm:$0xff] (!%p2309_p10)   ;;  %2350 = vmatprep.subr.bf16.mxu0 (!%p2309_p10), %v2864_v58  ;;  %2370 = vmatprep.subr.bf16.mxu1 (!%p2309_p10), %v2864_v58 }
 0x7c3   : > { %v2304_v62 = vmul.f32 -1.442695, %v1728_v60  ;;  %v2305_v2 = vmul.f32 -1.442695, %v1730_v0  ;;  %v2710_v60 = vld [vmem:[%s3645_s4 + $0x10] sm:$0xff] (!%p2309_p10)   ;;  %v2712_v0 = vld [vmem:[%s3645_s4 + $0x20] sm:$0xff] (!%p2309_p10)  }
 0x7c4   : > { %2644 = vpow2.f32 %v2303_v61  ;;  %v2716_v61 = vld [vmem:[#allocation7] sm:$0xff] (!%p2309_p10)  }
 0x7c5   : > { %2646 = vpow2.f32 %v2304_v62  ;;  %v2711_v62 = vld [vmem:[%s3645_s4 + $0x18] sm:$0xff] (!%p2309_p10)  }
 0x7c6   : > { %2648 = vpow2.f32 %v2305_v2  ;;  %v2713_v2 = vld [vmem:[%s3645_s4 + $0x28] sm:$0xff] (!%p2309_p10)  }
 0x7c7   : > { %2650 = vtanh.f32 %v1729_v3  ;;  %v2719_v3 = vld [vmem:[#allocation7 + $0x18] sm:$0xff] (!%p2309_p10)  }
 0x7ce   : > { %v2645_v5 = vpop.eup %2644 }
 0x7cf   : > { %v2647_v6 = vpop.eup %2646  ;;  %v1734_v11 = vadd.f32 1.0, %v2645_v5  ;;  %v2714_v5 = vld [vmem:[%s3645_s4 + $0x30] sm:$0xff] (!%p2309_p10)  }
 0x7d0   : > { %v1740_v33 = vadd.f32 1.0, %v2647_v6  ;;  %v2649_v17 = vpop.eup %2648  ;;  %v2720_v6 = vld [vmem:[#allocation7 + $0x20] sm:$0xff] (!%p2309_p10)  }
 0x7d1   : > { %2652 = vrcp.f32 %v1734_v11  ;;  %v2651_v7 = vpop.eup %2650  ;;  %v1747_v37 = vadd.f32 1.0, %v2649_v17  ;;  %v2721_v17 = vld [vmem:[#allocation7 + $0x28] sm:$0xff] (!%p2309_p10)  }
 0x7d2   : > { %2654 = vrcp.f32 %v1740_v33  ;;  %v2715_v33 = vld [vmem:[%s3645_s4 + $0x38] sm:$0xff] (!%p2309_p10)  }
 0x7d3   : > { %2656 = vrcp.f32 %v1747_v37 }
 0x7db   : > { %v2653_v8 = vpop.eup %2652 }
 0x7dc   : > { %v2655_v12 = vpop.eup %2654  ;;  %v1754_v19 = vmul.f32 %v2653_v8, %v2651_v7  ;;  %v2722_v8 = vld [vmem:[#allocation7 + $0x30] sm:$0xff] (!%p2309_p10)  }
 0x7dd   : > { %v1753_v14 = vmul.f32 %v2655_v12, %v1751_v9  ;;  %v2657_v21 = vpop.eup %2656  ;;  %v2723_v9 = vld [vmem:[#allocation7 + $0x38] sm:$0xff] (!%p2309_p10)   ;;  %v2310_v12 = vld [vmem:[%s3646_s5] ss:$0 sm:$0xff] (!%p2309_p10) }
 0x7df   : > { %v1755_v38 = vadd.f32 %v1754_v19, %v1753_v14 }
 0x7e1   : > { %2658 = vtanh.f32 %v1755_v38  ;;  %v1881_v50 = vrot.slane %v1755_v38, 6 }
 0x7eb   : > { %v2659_v22 = vpop.eup %2658 }
 0x7ec   : > { %v1757_v30 = vmul.f32 %v2659_v22, %v2657_v21 }
 0x7ee   : > { %1758 = vst [vmem:[#allocation2 + $0x8] sm:$0x30] %v1757_v30  ;;  %v1759_v31 = vpack.c.bf16 %v1757_v30, %v1757_v30 }
 0x7f0   : > { %v1761_v25 = vrot.slane %v1759_v31, 2  ;;  %v2319_v31 = vld [vmem:[%s3648_s7] ss:$0 sm:$0xff] (!%p2309_p10) }
 0x7f2   : > { %1796 = vmatmul.mubr.bf16.vlgmr.msra.gmra.mrb[32].mxu0 %v1761_v25  ;;  %1837 = vmatmul.mubr.bf16.vlgmr.msra.gmra.mrb[32].mxu1 %v1761_v25 }
 0x7f3   : > { %2351 = vmatpush3.bf16.msra.mxu0 (!%p2309_p10), %v2708_v57  ;;  %2366 = vmatprep.mubr.msk.bf16.mxu0 (!%p2309_p10), %vm2865_vm0, %v2864_v58 }
 0x7f4   : > { %2352 = vmatprep.subr.bf16.mxu0 (!%p2309_p10), %v2864_v58  ;;  %2386 = vmatprep.mubr.msk.bf16.mxu1 (!%p2309_p10), %vm2865_vm0, %v2864_v58 }
 0x7f5   : > { %2371 = vmatpush3.bf16.msra.mxu1 (!%p2309_p10), %v2716_v61 }
 0x7f6   : > { %2372 = vmatprep.subr.bf16.mxu1 (!%p2309_p10), %v2864_v58 }
 0x7f7   : > { %2353 = vmatpush3.bf16.msra.mxu0 (!%p2309_p10), %v2709_v59 }
 0x7f8   : > { %2354 = vmatprep.subr.bf16.mxu0 (!%p2309_p10), %v2864_v58 }
 0x7f9   : > { %2373 = vmatpush3.bf16.msra.mxu1 (!%p2309_p10), %v2717_v63 }
 0x7fa   : > { %2374 = vmatprep.subr.bf16.mxu1 (!%p2309_p10), %v2864_v58 }
 0x7fb   : > { %2355 = vmatpush3.bf16.msra.mxu0 (!%p2309_p10), %v2710_v60 }
 0x7fc   : > { %2356 = vmatprep.subr.bf16.mxu0 (!%p2309_p10), %v2864_v58 }
 0x7fd   : > { %2375 = vmatpush3.bf16.msra.mxu1 (!%p2309_p10), %v2718_v1 }
 0x7fe   : > { %2376 = vmatprep.subr.bf16.mxu1 (!%p2309_p10), %v2864_v58 }
 0x7ff   : > { %2357 = vmatpush3.bf16.msra.mxu0 (!%p2309_p10), %v2711_v62 }
 0x800   : > { %2358 = vmatprep.subr.bf16.mxu0 (!%p2309_p10), %v2864_v58 }
 0x801   : > { %2377 = vmatpush3.bf16.msra.mxu1 (!%p2309_p10), %v2719_v3 }
 0x802   : > { %2378 = vmatprep.subr.bf16.mxu1 (!%p2309_p10), %v2864_v58 }
 0x803   : > { %2359 = vmatpush3.bf16.msra.mxu0 (!%p2309_p10), %v2712_v0 }
 0x804   : > { %2360 = vmatprep.subr.bf16.mxu0 (!%p2309_p10), %v2864_v58 }
 0x805   : > { %2379 = vmatpush3.bf16.msra.mxu1 (!%p2309_p10), %v2720_v6 }
 0x806   : > { %2380 = vmatprep.subr.bf16.mxu1 (!%p2309_p10), %v2864_v58 }
 0x807   : > { %2361 = vmatpush3.bf16.msra.mxu0 (!%p2309_p10), %v2713_v2 }
 0x808   : > { %2362 = vmatprep.subr.bf16.mxu0 (!%p2309_p10), %v2864_v58 }
 0x809   : > { %2381 = vmatpush3.bf16.msra.mxu1 (!%p2309_p10), %v2721_v17 }
 0x80a   : > { %2382 = vmatprep.subr.bf16.mxu1 (!%p2309_p10), %v2864_v58 }
 0x80b   : > { %2363 = vmatpush3.bf16.msra.mxu0 (!%p2309_p10), %v2714_v5 }
 0x80c   : > { %2364 = vmatprep.subr.bf16.mxu0 (!%p2309_p10), %v2864_v58 }
 0x80d   : > { %2383 = vmatpush3.bf16.msra.mxu1 (!%p2309_p10), %v2722_v8 }
 0x80e   : > { %2384 = vmatprep.subr.bf16.mxu1 (!%p2309_p10), %v2864_v58 }
 0x80f   : > { %2365 = vmatpush3.bf16.msra.mxu0 (!%p2309_p10), %v2715_v33 }
 0x811   : > { %2385 = vmatpush3.bf16.msra.mxu1 (!%p2309_p10), %v2723_v9 }
 0x8c5   : > { %v1797_v10 = vpop.f32.mrb[32].mxu0  ;;  %v1838_v27 = vpop.f32.mrb[32].mxu1 }
 0x8c6   : > { %v1849_v32 = vrot.slane %v1797_v10, 2  ;;  %v1799_v4 = vpop.f32.mrb[33].mxu0  ;;  %v1840_v35 = vpop.f32.mrb[33].mxu1  ;;  %v1851_v42 = vrot.slane %v1838_v27, 2 }
 0x8c7   : > { %v1850_v34 = vrot.slane %v1799_v4, 2  ;;  %v1801_v13 = vpop.f32.mrb[34].mxu0  ;;  %v1842_v23 = vpop.f32.mrb[34].mxu1  ;;  %v1852_v41 = vrot.slane %v1840_v35, 2 }
 0x8c8   : > { %v1857_v16 = vadd.f32 %v1849_v32, %v3311_v24  ;;  %v1802_v20 = vpop.f32.mrb[35].mxu0  ;;  %v1843_v15 = vpop.f32.mrb[35].mxu1  ;;  %v1859_v44 = vadd.f32 %v1851_v42, %v3313_v26 }
 0x8c9   : > { %v1858_v39 = vadd.f32 %v1850_v34, %v3315_v28  ;;  %v1860_v18 = vadd.f32 %v1852_v41, %v3317_v29 }
 0x8ca   : > { %v2306_v36 = vmul.f32 -1.442695, %v1857_v16 }
 0x8cb   : > { %v2307_v40 = vmul.f32 -1.442695, %v1858_v39  ;;  %v2308_v43 = vmul.f32 -1.442695, %v1860_v18 }
 0x8cc   : > { %2660 = vpow2.f32 %v2306_v36 }
 0x8cd   : > { %2662 = vpow2.f32 %v2307_v40 }
 0x8ce   : > { %2664 = vpow2.f32 %v2308_v43 }
 0x8cf   : > { %2666 = vtanh.f32 %v1859_v44 }
 0x8d6   : > { %v2661_v45 = vpop.eup %2660 }
 0x8d7   : > { %v2663_v46 = vpop.eup %2662  ;;  %v1864_v47 = vadd.f32 1.0, %v2661_v45 }
 0x8d8   : > { %v1870_v24 = vadd.f32 1.0, %v2663_v46  ;;  %v2665_v28 = vpop.eup %2664 }
 0x8d9   : > { %2668 = vrcp.f32 %v1864_v47  ;;  %v2667_v48 = vpop.eup %2666  ;;  %v1877_v53 = vadd.f32 1.0, %v2665_v28 }
 0x8da   : > { %2670 = vrcp.f32 %v1870_v24 }
 0x8db   : > { %2672 = vrcp.f32 %v1877_v53 }
 0x8e3   : > { %v2669_v49 = vpop.eup %2668 }
 0x8e4   : > { %v2671_v51 = vpop.eup %2670  ;;  %v1884_v52 = vmul.f32 %v2669_v49, %v2667_v48 }
 0x8e5   : > { %v1883_v29 = vmul.f32 %v2671_v51, %v1881_v50  ;;  %v2673_v26 = vpop.eup %2672 }
 0x8e7   : > { %v1885_v54 = vadd.f32 %v1884_v52, %v1883_v29 }
 0x8e9   : > { %2674 = vtanh.f32 %v1885_v54 }
 0x8f0   : > { %1892 = sbr.rel (%p2309_p10) target bundleno = 2731 (0xaab), region = 72 }
 0x8f3   : > { %v2675_v55 = vpop.eup %2674 }
 0x8f4   : > { %v1887_v56 = vmul.f32 %v2675_v55, %v2673_v26 }
 0x8f6   : > { %1888 = vst [vmem:[#allocation2 + $0x8] sm:$0xc0] %v1887_v56  ;;  %v1893_v11 = vpack.c.bf16 (!%p2309_p10), %v1887_v56, %v1887_v56 }
 0x8f8   : > { %v1918_v7 = vrot.slane %v1893_v11, 3 }
 0x8fa   : > { %2367 = vmatmul.mubr.bf16.vlgmr.msra.gmra.mrb[0].mxu0 %v1918_v7 }
 0x9cd   : > { %v2002_v19 = vpop.f32.mrb[0].mxu0 }
 0x9ce   : > { %v2003_v37 = vadd.f32 %v2310_v12, %v2002_v19  ;;  %v2368_v14 = vpop.f32.mrb[1].mxu0 }
 0x9cf   : > { %v2005_v38 = vpop.f32.mrb[2].mxu0 }
 0x9d0   : > { %v2008_v21 = vmax.f32 %v2003_v37, 0.0  ;;  %v2369_v22 = vpop.f32.mrb[3].mxu0 }
 0x9d2   : > { %v2009_v30 = vpack.c.bf16 %v2008_v21, %v2008_v21 }
 0x9d4   : > { %2387 = vmatmul.mubr.bf16.vlgmr.msra.gmra.mrb[0].mxu1 %v2009_v30 }
 0xaa7   : > { %v2115_v25 = vpop.f32.mrb[0].mxu1 }
 0xaa8   : > { %v2116_v10 = vadd.f32 %v2319_v31, %v2115_v25  ;;  %v2388_v27 = vpop.f32.mrb[1].mxu1 }
 0xaa9   : > { %v2118_v32 = vpop.f32.mrb[2].mxu1 }
 0xaaa   : > { %2121 = vst [vmem:[%s3649_s8] sm:$0x3] %v2116_v10  ;;  %v2389_v4 = vpop.f32.mrb[3].mxu1 }
 0xaab PF: > { %p21_p12 = scmp.ge.s32.totalorder %s2956_s15, 5   ;;  %s3666_s27 = smov %s2846_s28 }
 0xaac   : > { %s3667_s28 = smov %s2850_s29  ;;  %s3668_s29 = smov %s2982_s19 }
 0xaad   : > { %s3669_s30 = smov %s2956_s15  ;;  %23 = sbr.rel (!%p21_p12) target bundleno = 8 (0x8), region = 116 }
 0xab4   :  { %2133 = vsyncpa [#allocation4], 1 }
 0xab5   :  { %2135 = vsyncpa [#allocation4 + $0x1], 1 }
 0xab6   :  { %2136 = vsyncpa [#allocation6], 1 }
 0xab7   :  { %2138 = vsyncpa [#allocation6 + $0x1], 1 }

</bundles_post_ra>
